<compile_context>
chip_gen: v6e
topology: v6e:2x2x1
jax: 0.10.0
libtpu: 0.0.40
codegen_flags: <defaults>
</compile_context>

<pallas_src>
import functools
import math

import jax
import jax.numpy as jnp
import numpy as np
from jax.experimental import pallas as pl
from jax.experimental.pallas import tpu as pltpu


# ---------------------------------------------------------------------------
# Helpers
# ---------------------------------------------------------------------------
def _layernorm(x, gamma, beta, eps):
    mean = jnp.mean(x, axis=-1, keepdims=True)
    var = jnp.mean(jnp.square(x - mean), axis=-1, keepdims=True)
    return (x - mean) * jax.lax.rsqrt(var + eps) * gamma + beta


# ---------------------------------------------------------------------------
# Fused Pallas kernel: whole decoder, grid over layers, x resident in VMEM.
# ---------------------------------------------------------------------------
def fused_decoder_kernel(
    tgt_ref, pos_ref, kin_ref, vin_ref, hmask_ref, gmat_ref,
    wpack_ref, w1pack_ref, pvec_ref,
    out_ref,
    x_ref,
    *, batch, num_heads, eps, norm_first, apply_final_norm,
):
    layer = pl.program_id(0)
    BL, E = tgt_ref.shape
    BS = kin_ref.shape[0]
    L = BL // batch
    S = BS // batch
    HS = num_heads * S
    hidden = w1pack_ref.shape[2]

    # Layer 0: load the (layer-independent) target tokens into the resident activation.
    @pl.when(layer == 0)
    def _():
        x_ref[...] = tgt_ref[...]

    # --- unpack per-layer parameters (all pre-transposed for x @ W) --------------
    # NOTE: wq^T / bq already carry the 1/sqrt(head_dim) attention scale (host fold).
    wq_t = wpack_ref[0, 0 * E:1 * E, :]            # (E, E)
    wk_t = wpack_ref[0, 1 * E:2 * E, :]            # (E, E)
    wv_t = wpack_ref[0, 2 * E:3 * E, :]            # (E, E)
    wo_t = wpack_ref[0, 3 * E:4 * E, :]            # (E, E)
    w2_t = wpack_ref[0, 4 * E:4 * E + hidden, :]   # (hidden, E)
    w1_t = w1pack_ref[0, 0:E, :]                   # (E, hidden)
    bm1 = w1pack_ref[0, E:E + 1, :]                # (1, hidden)
    g1 = pvec_ref[0, 0:1, :]
    b1 = pvec_ref[0, 1:2, :]
    g2 = pvec_ref[0, 2:3, :]
    b2 = pvec_ref[0, 3:4, :]
    bq = pvec_ref[0, 4:5, :]
    bk = pvec_ref[0, 5:6, :]
    bv = pvec_ref[0, 6:7, :]
    bo = pvec_ref[0, 7:8, :]
    bm2 = pvec_ref[0, 8:9, :]
    gf = pvec_ref[0, 9:10, :]
    bf = pvec_ref[0, 10:11, :]

    x = x_ref[...]                                 # (B*L, E) resident activation
    if norm_first:
        x = _layernorm(x, g1, b1, eps)

    # --- multi-head cross-attention: q = x + pos, k = mem + mpos, v = mem --------
    q_in = x + pos_ref[...]
    Q = jnp.dot(q_in, wq_t, preferred_element_type=jnp.float32) + bq          # (BL, E) pre-scaled
    K = jnp.dot(kin_ref[...], wk_t, preferred_element_type=jnp.float32) + bk  # (BS, E)
    V = jnp.dot(vin_ref[...], wv_t, preferred_element_type=jnp.float32) + bv  # (BS, E)

    # Replicate keys/values once per head along the key axis and zero out channels
    # that do not belong to that head; all heads then reduce in single full-width
    # contractions (no per-head loop, no lane-axis concatenate).
    hmask = hmask_ref[...]                                        # (HS, E)
    Krep = jnp.concatenate([K.reshape(batch, S, E)] * num_heads, axis=1) * hmask[None]
    Vrep = jnp.concatenate([V.reshape(batch, S, E)] * num_heads, axis=1) * hmask[None]
    Q3 = Q.reshape(batch, L, E)

    s = jnp.einsum("ble,bke->blk", Q3, Krep,
                   preferred_element_type=jnp.float32)            # (B, L, H*S), scale folded in Wq
    s2 = s.reshape(BL, HS)
    # Global row max >= every per-head max: a valid numerically-stable shift that
    # leaves each head's softmax unchanged.
    s2 = s2 - jnp.max(s2, axis=-1, keepdims=True)
    p = jnp.exp(s2)
    # Per-head softmax denominators broadcast back to (BL, H*S) with one matmul
    # against the block-diagonal ones matrix G.
    denom = jnp.dot(p, gmat_ref[...], preferred_element_type=jnp.float32)
    p = p * pl.reciprocal(denom, approx=True)
    ctx = jnp.einsum("blk,bke->ble", p.reshape(batch, L, HS), Vrep,
                     preferred_element_type=jnp.float32)            # (B, L, E)
    attn = jnp.dot(ctx.reshape(BL, E), wo_t,
                   preferred_element_type=jnp.float32) + bo
    x = x + attn                                                    # dropout1 = identity

    # --- MLP block ---------------------------------------------------------------
    xn = _layernorm(x, g2, b2, eps)
    h1 = jnp.maximum(jnp.dot(xn, w1_t, preferred_element_type=jnp.float32) + bm1, 0.0)
    x = x + (jnp.dot(h1, w2_t, preferred_element_type=jnp.float32) + bm2)  # dropout2 = identity

    x_ref[...] = x                                 # carry to next layer (stays in VMEM)
    if apply_final_norm:
        out_ref[0] = _layernorm(x, gf, bf, eps)
    else:
        out_ref[0] = x


# ---------------------------------------------------------------------------
# Host-side weight packing (pre-transposed, stacked along a leading layer axis).
# The attention scale 1/sqrt(head_dim) is folded into wq^T and bq here.
# ---------------------------------------------------------------------------
def _pack_params(layer_params, final_norm, qscale):
    wpacks, w1packs, pvecs = [], [], []
    for p in layer_params:
        wpacks.append(jnp.concatenate(
            [p["wq"].T * qscale, p["wk"].T, p["wv"].T, p["wo"].T, p["w2"].T], axis=0))
        w1packs.append(jnp.concatenate([p["w1"].T, p["bm1"]], axis=0))
        pvecs.append(jnp.concatenate(
            [p["g1"], p["b1"], p["g2"], p["b2"],
             p["bq"] * qscale, p["bk"], p["bv"], p["bo"], p["bm2"],
             final_norm["g"], final_norm["b"]], axis=0))
    return jnp.stack(wpacks), jnp.stack(w1packs), jnp.stack(pvecs)


# ---------------------------------------------------------------------------
# Full decoder forward: layout glue in plain JAX + one fused pallas_call.
# ---------------------------------------------------------------------------
def transformer_decoder_forward(tgt_nchw, memory_5d, pos_emb, memory_pos_emb,
                                layer_params, final_norm,
                                *, num_heads, eps, norm_first, apply_final_norm):
    B, E, Hsp, Wsp = tgt_nchw.shape
    L = Hsp * Wsp
    _, T, Hm, Wm, _ = memory_5d.shape
    S = T * Hm * Wm
    num_layers = len(layer_params)
    hidden = layer_params[0]["w1"].shape[0]
    hd = E // num_heads
    BL, BS, HS = B * L, B * S, num_heads * S

    # torch: tgt.flatten(2).permute(2,0,1) -> (L,B,E).  We use batch-major flat tokens.
    x0 = jnp.transpose(tgt_nchw.reshape(B, E, L), (0, 2, 1)).reshape(BL, E)
    # torch: memory.permute(1,2,3,0,4).flatten(0,2) -> (S,B,E).  Batch-major flat here.
    mem = memory_5d.reshape(B, S, E).reshape(BS, E)
    pos = jnp.transpose(pos_emb, (1, 0, 2)).reshape(BL, E)
    mpos = jnp.transpose(memory_pos_emb, (1, 0, 2)).reshape(BS, E)
    kin = mem + mpos            # layer-invariant key input
    vin = mem                   # layer-invariant value input

    # Head bookkeeping constants for the fused all-head attention.
    row_head = jnp.repeat(jnp.arange(num_heads), S)        # (HS,)
    chan_head = jnp.repeat(jnp.arange(num_heads), hd)      # (E,)
    hmask = (row_head[:, None] == chan_head[None, :]).astype(jnp.float32)   # (HS, E)
    gmat = (row_head[:, None] == row_head[None, :]).astype(jnp.float32)     # (HS, HS)

    wpack, w1pack, pvec = _pack_params(layer_params, final_norm,
                                       qscale=1.0 / math.sqrt(hd))

    kernel = functools.partial(
        fused_decoder_kernel, batch=B, num_heads=num_heads, eps=eps,
        norm_first=norm_first, apply_final_norm=apply_final_norm)

    def shared(shape):
        # Constant block index -> DMA'd once, stays resident in VMEM across layers.
        return pl.BlockSpec(shape, lambda l: (0, 0))

    def per_layer(shape):
        # Per-layer slab; double-buffered by the Pallas pipeline (weight prefetch
        # overlaps the previous layer's compute).
        return pl.BlockSpec((1,) + shape, lambda l: (l, 0, 0))

    out = pl.pallas_call(
        kernel,
        grid=(num_layers,),
        in_specs=[
            shared((BL, E)),                 # tgt tokens (used only at layer 0)
            shared((BL, E)),                 # query pos emb
            shared((BS, E)),                 # k input  = mem + mpos
            shared((BS, E)),                 # v input  = mem
            shared((HS, E)),                 # per-head channel mask
            shared((HS, HS)),                # block-diagonal ones (softmax denom)
            per_layer((4 * E + hidden, E)),  # [wq^T*s; wk^T; wv^T; wo^T; w2^T]
            per_layer((E + 1, hidden)),      # [w1^T; bm1]
            per_layer((11, E)),              # [g1,b1,g2,b2,bq*s,bk,bv,bo,bm2,gf,bf]
        ],
        out_specs=pl.BlockSpec((1, BL, E), lambda l: (l, 0, 0)),
        out_shape=jax.ShapeDtypeStruct((num_layers, BL, E), jnp.float32),
        scratch_shapes=[pltpu.VMEM((BL, E), jnp.float32)],   # resident activation x
        compiler_params=pltpu.CompilerParams(
            dimension_semantics=("arbitrary",)),             # layers carry state
    )(x0, pos, kin, vin, hmask, gmat, wpack, w1pack, pvec)

    # (num_layers, B*L, E) -> torch layout (num_layers, L, B, E)
    return jnp.transpose(out.reshape(num_layers, B, L, E), (0, 2, 1, 3))


# ---------------------------------------------------------------------------
# Pure-JAX reference (independent math: per-head einsums + exact softmax).
# ---------------------------------------------------------------------------
def reference_forward(tgt_nchw, memory_5d, pos_emb, memory_pos_emb,
                      layer_params, final_norm,
                      *, num_heads, eps, norm_first, apply_final_norm):
    B, E, Hsp, Wsp = tgt_nchw.shape
    L = Hsp * Wsp
    S = int(np.prod(memory_5d.shape[1:4]))
    hd = E // num_heads
    x = jnp.transpose(tgt_nchw.reshape(B, E, L), (0, 2, 1))   # (B, L, E)
    mem = memory_5d.reshape(B, S, E)
    pos = jnp.transpose(pos_emb, (1, 0, 2))
    mpos = jnp.transpose(memory_pos_emb, (1, 0, 2))
    outs = []
    for p in layer_params:
        if norm_first:
            x = _layernorm(x, p["g1"], p["b1"], eps)
        Q = (x + pos) @ p["wq"].T + p["bq"]
        K = (mem + mpos) @ p["wk"].T + p["bk"]
        V = mem @ p["wv"].T + p["bv"]
        Qh = Q.reshape(B, L, num_heads, hd)
        Kh = K.reshape(B, S, num_heads, hd)
        Vh = V.reshape(B, S, num_heads, hd)
        s = jnp.einsum("blhd,bshd->bhls", Qh, Kh) / math.sqrt(hd)
        pr = jax.nn.softmax(s, axis=-1)
        o = jnp.einsum("bhls,bshd->blhd", pr, Vh).reshape(B, L, E)
        x = x + (o @ p["wo"].T + p["bo"])
        xn = _layernorm(x, p["g2"], p["b2"], eps)
        h1 = jnp.maximum(xn @ p["w1"].T + p["bm1"], 0.0)
        x = x + (h1 @ p["w2"].T + p["bm2"])
        y = _layernorm(x, final_norm["g"], final_norm["b"], eps) if apply_final_norm else x
        outs.append(y)
    return jnp.transpose(jnp.stack(outs, axis=0), (0, 2, 1, 3))   # (NL, L, B, E)


# ---------------------------------------------------------------------------
# Deterministic parameter initialization.
# ---------------------------------------------------------------------------
def init_layer_params(key, emb_dim, hidden):
    ks = jax.random.split(key, 16)
    n = lambda k, s, sc=0.05: (sc * jax.random.normal(k, s)).astype(jnp.float32)
    return {
        "g1": 1.0 + n(ks[0], (1, emb_dim), 0.1), "b1": n(ks[1], (1, emb_dim), 0.1),
        "g2": 1.0 + n(ks[2], (1, emb_dim), 0.1), "b2": n(ks[3], (1, emb_dim), 0.1),
        "wq": n(ks[4], (emb_dim, emb_dim)), "wk": n(ks[5], (emb_dim, emb_dim)),
        "wv": n(ks[6], (emb_dim, emb_dim)),
        "bq": n(ks[7], (1, emb_dim)), "bk": n(ks[8], (1, emb_dim)), "bv": n(ks[9], (1, emb_dim)),
        "wo": n(ks[10], (emb_dim, emb_dim)), "bo": n(ks[11], (1, emb_dim)),
        "w1": n(ks[12], (hidden, emb_dim)), "bm1": n(ks[13], (1, hidden)),
        "w2": n(ks[14], (emb_dim, hidden)), "bm2": n(ks[15], (1, emb_dim)),
    }


if __name__ == "__main__":
    # Module config
    num_layers = 2
    emb_dim = 32
    num_heads = 4
    mlp_factor = 2
    hidden = mlp_factor * emb_dim
    layer_norm_eps = 1e-5
    norm_first = True
    apply_final_norm = True            # decoder `norm=True`

    # Input shapes
    B, H, W = 2, 4, 4                  # tgt: (B, E, H, W), L = 16
    T, Hm, Wm = 2, 2, 2                # memory: (B, T, Hm, Wm, E), S = 8
    L, S = H * W, T * Hm * Wm

    key = jax.random.PRNGKey(0)
    k_in, k_par = jax.random.split(key)
    ki = jax.random.split(k_in, 4)
    tgt = jax.random.normal(ki[0], (B, emb_dim, H, W), dtype=jnp.float32)
    memory = jax.random.normal(ki[1], (B, T, Hm, Wm, emb_dim), dtype=jnp.float32)
    pos_emb = 0.1 * jax.random.normal(ki[2], (L, B, emb_dim), dtype=jnp.float32)
    memory_pos_emb = 0.1 * jax.random.normal(ki[3], (S, B, emb_dim), dtype=jnp.float32)

    kp = jax.random.split(k_par, num_layers + 1)
    layer_params = [init_layer_params(kp[i], emb_dim, hidden) for i in range(num_layers)]
    final_norm = {
        "g": 1.0 + 0.1 * jax.random.normal(jax.random.split(kp[-1])[0], (1, emb_dim)).astype(jnp.float32),
        "b": 0.1 * jax.random.normal(jax.random.split(kp[-1])[1], (1, emb_dim)).astype(jnp.float32),
    }

    out = transformer_decoder_forward(
        tgt, memory, pos_emb, memory_pos_emb, layer_params, final_norm,
        num_heads=num_heads, eps=layer_norm_eps,
        norm_first=norm_first, apply_final_norm=apply_final_norm)
    out = jax.block_until_ready(out)

    ref = reference_forward(
        tgt, memory, pos_emb, memory_pos_emb, layer_params, final_norm,
        num_heads=num_heads, eps=layer_norm_eps,
        norm_first=norm_first, apply_final_norm=apply_final_norm)
    ref = jax.block_until_ready(ref)

    assert out.shape == (num_layers, L, B, emb_dim), out.shape
    # Tolerance accounts for the EUP approximate-reciprocal softmax normalization.
    np.testing.assert_allclose(np.asarray(out), np.asarray(ref), rtol=5e-3, atol=5e-3)
    print("KERNEL_OK")
</pallas_src>

<mosaic_0001>
module attributes {stable_mosaic.version = 11 : i64} {
  func.func @fused_decoder_kernel(%arg0: i32, %arg1: memref<32x32xf32, #tpu.memory_space<vmem>>, %arg2: memref<32x32xf32, #tpu.memory_space<vmem>>, %arg3: memref<16x32xf32, #tpu.memory_space<vmem>>, %arg4: memref<16x32xf32, #tpu.memory_space<vmem>>, %arg5: memref<32x32xf32, #tpu.memory_space<vmem>>, %arg6: memref<32x32xf32, #tpu.memory_space<vmem>>, %arg7: memref<1x192x32xf32, #tpu.memory_space<vmem>>, %arg8: memref<1x33x64xf32, #tpu.memory_space<vmem>>, %arg9: memref<1x11x32xf32, #tpu.memory_space<vmem>>, %arg10: memref<1x32x32xf32, #tpu.memory_space<vmem>>, %arg11: memref<32x32xf32, #tpu.memory_space<vmem>>) attributes {dimension_semantics = [#tpu.dimension_semantics<arbitrary>], iteration_bounds = array<i64: 2>, scalar_prefetch = 0 : i64, scratch_operands = 1 : i64, tpu.core_type = #tpu.core_type<tc>, window_params = [{pipeline_mode = #tpu.pipeline_mode<synchronous>, transform_indices = @transform_0, window_bounds = array<i64: 32, 32>}, {pipeline_mode = #tpu.pipeline_mode<synchronous>, transform_indices = @transform_1, window_bounds = array<i64: 32, 32>}, {pipeline_mode = #tpu.pipeline_mode<synchronous>, transform_indices = @transform_2, window_bounds = array<i64: 16, 32>}, {pipeline_mode = #tpu.pipeline_mode<synchronous>, transform_indices = @transform_3, window_bounds = array<i64: 16, 32>}, {pipeline_mode = #tpu.pipeline_mode<synchronous>, transform_indices = @transform_4, window_bounds = array<i64: 32, 32>}, {pipeline_mode = #tpu.pipeline_mode<synchronous>, transform_indices = @transform_5, window_bounds = array<i64: 32, 32>}, {transform_indices = @transform_6, window_bounds = array<i64: 1, 192, 32>}, {transform_indices = @transform_7, window_bounds = array<i64: 1, 33, 64>}, {transform_indices = @transform_8, window_bounds = array<i64: 1, 11, 32>}, {transform_indices = @transform_9, window_bounds = array<i64: 1, 32, 32>}]} {
    %c0_i32 = arith.constant 0 : i32
    %0 = arith.cmpi eq, %arg0, %c0_i32 : i32
    %1 = arith.extui %0 : i1 to i32
    %c0_i32_0 = arith.constant 0 : i32
    %2 = arith.cmpi ne, %1, %c0_i32_0 : i32
    scf.if %2 {
      %c0_82 = arith.constant 0 : index
      %c0_83 = arith.constant 0 : index
      %162 = vector.load %arg1[%c0_82, %c0_83] : memref<32x32xf32, #tpu.memory_space<vmem>>, vector<32x32xf32>
      %c0_84 = arith.constant 0 : index
      %c0_85 = arith.constant 0 : index
      %163 = vector.load %arg11[%c0_84, %c0_85] : memref<32x32xf32, #tpu.memory_space<vmem>>, vector<32x32xf32>
      tpu.vector_store %arg11[%c0_84, %c0_85], %162 {strides = array<i32>} : memref<32x32xf32, #tpu.memory_space<vmem>>, vector<32x32xf32>,
    } else {
    }
    %c0 = arith.constant 0 : index
    %c0_1 = arith.constant 0 : index
    %c0_2 = arith.constant 0 : index
    %3 = vector.load %arg7[%c0, %c0_1, %c0_2] : memref<1x192x32xf32, #tpu.memory_space<vmem>>, vector<1x32x32xf32>
    %4 = vector.shape_cast %3 : vector<1x32x32xf32> to vector<32x32xf32>
    %c0_3 = arith.constant 0 : index
    %c32 = arith.constant 32 : index
    %c0_4 = arith.constant 0 : index
    %5 = vector.load %arg7[%c0_3, %c32, %c0_4] : memref<1x192x32xf32, #tpu.memory_space<vmem>>, vector<1x32x32xf32>
    %6 = vector.shape_cast %5 : vector<1x32x32xf32> to vector<32x32xf32>
    %c0_5 = arith.constant 0 : index
    %c64 = arith.constant 64 : index
    %c0_6 = arith.constant 0 : index
    %7 = vector.load %arg7[%c0_5, %c64, %c0_6] : memref<1x192x32xf32, #tpu.memory_space<vmem>>, vector<1x32x32xf32>
    %8 = vector.shape_cast %7 : vector<1x32x32xf32> to vector<32x32xf32>
    %c0_7 = arith.constant 0 : index
    %c96 = arith.constant 96 : index
    %c0_8 = arith.constant 0 : index
    %9 = vector.load %arg7[%c0_7, %c96, %c0_8] : memref<1x192x32xf32, #tpu.memory_space<vmem>>, vector<1x32x32xf32>
    %10 = vector.shape_cast %9 : vector<1x32x32xf32> to vector<32x32xf32>
    %c0_9 = arith.constant 0 : index
    %c128 = arith.constant 128 : index
    %c0_10 = arith.constant 0 : index
    %11 = vector.load %arg7[%c0_9, %c128, %c0_10] : memref<1x192x32xf32, #tpu.memory_space<vmem>>, vector<1x64x32xf32>
    %12 = vector.shape_cast %11 : vector<1x64x32xf32> to vector<64x32xf32>
    %c0_11 = arith.constant 0 : index
    %c0_12 = arith.constant 0 : index
    %c0_13 = arith.constant 0 : index
    %13 = vector.load %arg8[%c0_11, %c0_12, %c0_13] : memref<1x33x64xf32, #tpu.memory_space<vmem>>, vector<1x32x64xf32>
    %14 = vector.shape_cast %13 : vector<1x32x64xf32> to vector<32x64xf32>
    %c0_14 = arith.constant 0 : index
    %c32_15 = arith.constant 32 : index
    %c0_16 = arith.constant 0 : index
    %15 = vector.load %arg8[%c0_14, %c32_15, %c0_16] : memref<1x33x64xf32, #tpu.memory_space<vmem>>, vector<1x1x64xf32>
    %16 = vector.shape_cast %15 : vector<1x1x64xf32> to vector<1x64xf32>
    %c0_17 = arith.constant 0 : index
    %c0_18 = arith.constant 0 : index
    %c0_19 = arith.constant 0 : index
    %17 = vector.load %arg9[%c0_17, %c0_18, %c0_19] : memref<1x11x32xf32, #tpu.memory_space<vmem>>, vector<1x1x32xf32>
    %18 = vector.shape_cast %17 : vector<1x1x32xf32> to vector<1x32xf32>
    %c0_20 = arith.constant 0 : index
    %c1 = arith.constant 1 : index
    %c0_21 = arith.constant 0 : index
    %19 = vector.load %arg9[%c0_20, %c1, %c0_21] : memref<1x11x32xf32, #tpu.memory_space<vmem>>, vector<1x1x32xf32>
    %20 = vector.shape_cast %19 : vector<1x1x32xf32> to vector<1x32xf32>
    %c0_22 = arith.constant 0 : index
    %c2 = arith.constant 2 : index
    %c0_23 = arith.constant 0 : index
    %21 = vector.load %arg9[%c0_22, %c2, %c0_23] : memref<1x11x32xf32, #tpu.memory_space<vmem>>, vector<1x1x32xf32>
    %22 = vector.shape_cast %21 : vector<1x1x32xf32> to vector<1x32xf32>
    %c0_24 = arith.constant 0 : index
    %c3 = arith.constant 3 : index
    %c0_25 = arith.constant 0 : index
    %23 = vector.load %arg9[%c0_24, %c3, %c0_25] : memref<1x11x32xf32, #tpu.memory_space<vmem>>, vector<1x1x32xf32>
    %24 = vector.shape_cast %23 : vector<1x1x32xf32> to vector<1x32xf32>
    %c0_26 = arith.constant 0 : index
    %c4 = arith.constant 4 : index
    %c0_27 = arith.constant 0 : index
    %25 = vector.load %arg9[%c0_26, %c4, %c0_27] : memref<1x11x32xf32, #tpu.memory_space<vmem>>, vector<1x1x32xf32>
    %26 = vector.shape_cast %25 : vector<1x1x32xf32> to vector<1x32xf32>
    %c0_28 = arith.constant 0 : index
    %c5 = arith.constant 5 : index
    %c0_29 = arith.constant 0 : index
    %27 = vector.load %arg9[%c0_28, %c5, %c0_29] : memref<1x11x32xf32, #tpu.memory_space<vmem>>, vector<1x1x32xf32>
    %28 = vector.shape_cast %27 : vector<1x1x32xf32> to vector<1x32xf32>
    %c0_30 = arith.constant 0 : index
    %c6 = arith.constant 6 : index
    %c0_31 = arith.constant 0 : index
    %29 = vector.load %arg9[%c0_30, %c6, %c0_31] : memref<1x11x32xf32, #tpu.memory_space<vmem>>, vector<1x1x32xf32>
    %30 = vector.shape_cast %29 : vector<1x1x32xf32> to vector<1x32xf32>
    %c0_32 = arith.constant 0 : index
    %c7 = arith.constant 7 : index
    %c0_33 = arith.constant 0 : index
    %31 = vector.load %arg9[%c0_32, %c7, %c0_33] : memref<1x11x32xf32, #tpu.memory_space<vmem>>, vector<1x1x32xf32>
    %32 = vector.shape_cast %31 : vector<1x1x32xf32> to vector<1x32xf32>
    %c0_34 = arith.constant 0 : index
    %c8 = arith.constant 8 : index
    %c0_35 = arith.constant 0 : index
    %33 = vector.load %arg9[%c0_34, %c8, %c0_35] : memref<1x11x32xf32, #tpu.memory_space<vmem>>, vector<1x1x32xf32>
    %34 = vector.shape_cast %33 : vector<1x1x32xf32> to vector<1x32xf32>
    %c0_36 = arith.constant 0 : index
    %c9 = arith.constant 9 : index
    %c0_37 = arith.constant 0 : index
    %35 = vector.load %arg9[%c0_36, %c9, %c0_37] : memref<1x11x32xf32, #tpu.memory_space<vmem>>, vector<1x1x32xf32>
    %36 = vector.shape_cast %35 : vector<1x1x32xf32> to vector<1x32xf32>
    %c0_38 = arith.constant 0 : index
    %c10 = arith.constant 10 : index
    %c0_39 = arith.constant 0 : index
    %37 = vector.load %arg9[%c0_38, %c10, %c0_39] : memref<1x11x32xf32, #tpu.memory_space<vmem>>, vector<1x1x32xf32>
    %38 = vector.shape_cast %37 : vector<1x1x32xf32> to vector<1x32xf32>
    %c0_40 = arith.constant 0 : index
    %c0_41 = arith.constant 0 : index
    %39 = vector.load %arg11[%c0_40, %c0_41] : memref<32x32xf32, #tpu.memory_space<vmem>>, vector<32x32xf32>
    %cst = arith.constant dense<0.000000e+00> : vector<32xf32>
    %40 = vector.multi_reduction <add>, %39, %cst [1] : vector<32x32xf32> to vector<32xf32>
    %41 = vector.shape_cast %40 : vector<32xf32> to vector<32x1xf32>
    %cst_42 = arith.constant 3.200000e+01 : f32
    %42 = vector.broadcast %cst_42 : f32 to vector<32x1xf32>
    %43 = arith.divf %41, %42 : vector<32x1xf32>
    %44 = vector.broadcast %43 : vector<32x1xf32> to vector<32x32xf32>
    %45 = arith.subf %39, %44 : vector<32x32xf32>
    %46 = arith.mulf %45, %45 : vector<32x32xf32>
    %cst_43 = arith.constant dense<0.000000e+00> : vector<32xf32>
    %47 = vector.multi_reduction <add>, %46, %cst_43 [1] : vector<32x32xf32> to vector<32xf32>
    %48 = vector.shape_cast %47 : vector<32xf32> to vector<32x1xf32>
    %cst_44 = arith.constant 3.200000e+01 : f32
    %49 = vector.broadcast %cst_44 : f32 to vector<32x1xf32>
    %50 = arith.divf %48, %49 : vector<32x1xf32>
    %51 = vector.broadcast %43 : vector<32x1xf32> to vector<32x32xf32>
    %52 = arith.subf %39, %51 : vector<32x32xf32>
    %cst_45 = arith.constant 9.99999974E-6 : f32
    %53 = vector.broadcast %cst_45 : f32 to vector<32x1xf32>
    %54 = arith.addf %50, %53 : vector<32x1xf32>
    %55 = math.rsqrt %54 : vector<32x1xf32>
    %56 = vector.broadcast %55 : vector<32x1xf32> to vector<32x32xf32>
    %57 = arith.mulf %52, %56 : vector<32x32xf32>
    %58 = vector.broadcast %18 : vector<1x32xf32> to vector<32x32xf32>
    %59 = arith.mulf %57, %58 : vector<32x32xf32>
    %60 = vector.broadcast %20 : vector<1x32xf32> to vector<32x32xf32>
    %61 = arith.addf %59, %60 : vector<32x32xf32>
    %c0_46 = arith.constant 0 : index
    %c0_47 = arith.constant 0 : index
    %62 = vector.load %arg2[%c0_46, %c0_47] : memref<32x32xf32, #tpu.memory_space<vmem>>, vector<32x32xf32>
    %63 = arith.addf %61, %62 : vector<32x32xf32>
    %cst_48 = arith.constant dense<0.000000e+00> : vector<32x32xf32>
    %64 = tpu.matmul %63, %4, %cst_48 {dimension_numbers = #tpu.dot_dimension_numbers<[1], [0], [0], [1], [0, 0, 1, 1], [], []>} : vector<32x32xf32>, vector<32x32xf32>, vector<32x32xf32> -> vector<32x32xf32>
    %65 = vector.broadcast %26 : vector<1x32xf32> to vector<32x32xf32>
    %66 = arith.addf %64, %65 : vector<32x32xf32>
    %c0_49 = arith.constant 0 : index
    %c0_50 = arith.constant 0 : index
    %67 = vector.load %arg3[%c0_49, %c0_50] : memref<16x32xf32, #tpu.memory_space<vmem>>, vector<16x32xf32>
    %cst_51 = arith.constant dense<0.000000e+00> : vector<16x32xf32>
    %68 = tpu.matmul %67, %6, %cst_51 {dimension_numbers = #tpu.dot_dimension_numbers<[1], [0], [0], [1], [0, 0, 1, 1], [], []>} : vector<16x32xf32>, vector<32x32xf32>, vector<16x32xf32> -> vector<16x32xf32>
    %69 = vector.broadcast %28 : vector<1x32xf32> to vector<16x32xf32>
    %70 = arith.addf %68, %69 : vector<16x32xf32>
    %c0_52 = arith.constant 0 : index
    %c0_53 = arith.constant 0 : index
    %71 = vector.load %arg4[%c0_52, %c0_53] : memref<16x32xf32, #tpu.memory_space<vmem>>, vector<16x32xf32>
    %cst_54 = arith.constant dense<0.000000e+00> : vector<16x32xf32>
    %72 = tpu.matmul %71, %8, %cst_54 {dimension_numbers = #tpu.dot_dimension_numbers<[1], [0], [0], [1], [0, 0, 1, 1], [], []>} : vector<16x32xf32>, vector<32x32xf32>, vector<16x32xf32> -> vector<16x32xf32>
    %73 = vector.broadcast %30 : vector<1x32xf32> to vector<16x32xf32>
    %74 = arith.addf %72, %73 : vector<16x32xf32>
    %c0_55 = arith.constant 0 : index
    %c0_56 = arith.constant 0 : index
    %75 = vector.load %arg5[%c0_55, %c0_56] : memref<32x32xf32, #tpu.memory_space<vmem>>, vector<32x32xf32>
    %76 = vector.shape_cast %70 : vector<16x32xf32> to vector<2x8x32xf32>
    %77 = tpu.concatenate %76, %76, %76, %76 in 1 : vector<2x8x32xf32>, vector<2x8x32xf32>, vector<2x8x32xf32>, vector<2x8x32xf32> -> vector<2x32x32xf32>
    %78 = vector.shape_cast %75 : vector<32x32xf32> to vector<1x32x32xf32>
    %79 = vector.broadcast %78 : vector<1x32x32xf32> to vector<2x32x32xf32>
    %80 = arith.mulf %77, %79 : vector<2x32x32xf32>
    %81 = vector.shape_cast %74 : vector<16x32xf32> to vector<2x8x32xf32>
    %82 = tpu.concatenate %81, %81, %81, %81 in 1 : vector<2x8x32xf32>, vector<2x8x32xf32>, vector<2x8x32xf32>, vector<2x8x32xf32> -> vector<2x32x32xf32>
    %83 = vector.shape_cast %75 : vector<32x32xf32> to vector<1x32x32xf32>
    %84 = vector.broadcast %83 : vector<1x32x32xf32> to vector<2x32x32xf32>
    %85 = arith.mulf %82, %84 : vector<2x32x32xf32>
    %86 = vector.shape_cast %66 : vector<32x32xf32> to vector<2x16x32xf32>
    "tpu.trace_start"() <{level = 10 : i32, message = "ble,bke->blk"}> : () -> ()
    %cst_57 = arith.constant dense<0.000000e+00> : vector<2x16x32xf32>
    %87 = tpu.matmul %86, %80, %cst_57 {dimension_numbers = #tpu.dot_dimension_numbers<[2], [2], [1], [1], [0, 0, 0, 1, 1, 1], [0], [0]>} : vector<2x16x32xf32>, vector<2x32x32xf32>, vector<2x16x32xf32> -> vector<2x16x32xf32>
    "tpu.trace_stop"() : () -> ()
    %88 = vector.shape_cast %87 : vector<2x16x32xf32> to vector<32x32xf32>
    %cst_58 = arith.constant dense<0xFF800000> : vector<32xf32>
    %89 = vector.multi_reduction <maximumf>, %88, %cst_58 [1] : vector<32x32xf32> to vector<32xf32>
    %90 = vector.shape_cast %89 : vector<32xf32> to vector<32x1xf32>
    %91 = vector.broadcast %90 : vector<32x1xf32> to vector<32x32xf32>
    %92 = arith.subf %88, %91 : vector<32x32xf32>
    %93 = math.exp %92 : vector<32x32xf32>
    %c0_59 = arith.constant 0 : index
    %c0_60 = arith.constant 0 : index
    %94 = vector.load %arg6[%c0_59, %c0_60] : memref<32x32xf32, #tpu.memory_space<vmem>>, vector<32x32xf32>
    %cst_61 = arith.constant dense<0.000000e+00> : vector<32x32xf32>
    %95 = tpu.matmul %93, %94, %cst_61 {dimension_numbers = #tpu.dot_dimension_numbers<[1], [0], [0], [1], [0, 0, 1, 1], [], []>} : vector<32x32xf32>, vector<32x32xf32>, vector<32x32xf32> -> vector<32x32xf32>
    %96 = tpu.reciprocal %95 {approx = true} : vector<32x32xf32> -> vector<32x32xf32>
    %97 = arith.mulf %93, %96 : vector<32x32xf32>
    %98 = vector.shape_cast %97 : vector<32x32xf32> to vector<2x16x32xf32>
    "tpu.trace_start"() <{level = 10 : i32, message = "blk,bke->ble"}> : () -> ()
    %cst_62 = arith.constant dense<0.000000e+00> : vector<2x16x32xf32>
    %99 = tpu.matmul %98, %85, %cst_62 {dimension_numbers = #tpu.dot_dimension_numbers<[2], [1], [1], [2], [0, 0, 0, 1, 1, 2], [0], [0]>} : vector<2x16x32xf32>, vector<2x32x32xf32>, vector<2x16x32xf32> -> vector<2x16x32xf32>
    "tpu.trace_stop"() : () -> ()
    %100 = vector.shape_cast %99 : vector<2x16x32xf32> to vector<32x32xf32>
    %cst_63 = arith.constant dense<0.000000e+00> : vector<32x32xf32>
    %101 = tpu.matmul %100, %10, %cst_63 {dimension_numbers = #tpu.dot_dimension_numbers<[1], [0], [0], [1], [0, 0, 1, 1], [], []>} : vector<32x32xf32>, vector<32x32xf32>, vector<32x32xf32> -> vector<32x32xf32>
    %102 = vector.broadcast %32 : vector<1x32xf32> to vector<32x32xf32>
    %103 = arith.addf %101, %102 : vector<32x32xf32>
    %104 = arith.addf %61, %103 : vector<32x32xf32>
    %cst_64 = arith.constant dense<0.000000e+00> : vector<32xf32>
    %105 = vector.multi_reduction <add>, %104, %cst_64 [1] : vector<32x32xf32> to vector<32xf32>
    %106 = vector.shape_cast %105 : vector<32xf32> to vector<32x1xf32>
    %cst_65 = arith.constant 3.200000e+01 : f32
    %107 = vector.broadcast %cst_65 : f32 to vector<32x1xf32>
    %108 = arith.divf %106, %107 : vector<32x1xf32>
    %109 = vector.broadcast %108 : vector<32x1xf32> to vector<32x32xf32>
    %110 = arith.subf %104, %109 : vector<32x32xf32>
    %111 = arith.mulf %110, %110 : vector<32x32xf32>
    %cst_66 = arith.constant dense<0.000000e+00> : vector<32xf32>
    %112 = vector.multi_reduction <add>, %111, %cst_66 [1] : vector<32x32xf32> to vector<32xf32>
    %113 = vector.shape_cast %112 : vector<32xf32> to vector<32x1xf32>
    %cst_67 = arith.constant 3.200000e+01 : f32
    %114 = vector.broadcast %cst_67 : f32 to vector<32x1xf32>
    %115 = arith.divf %113, %114 : vector<32x1xf32>
    %116 = vector.broadcast %108 : vector<32x1xf32> to vector<32x32xf32>
    %117 = arith.subf %104, %116 : vector<32x32xf32>
    %cst_68 = arith.constant 9.99999974E-6 : f32
    %118 = vector.broadcast %cst_68 : f32 to vector<32x1xf32>
    %119 = arith.addf %115, %118 : vector<32x1xf32>
    %120 = math.rsqrt %119 : vector<32x1xf32>
    %121 = vector.broadcast %120 : vector<32x1xf32> to vector<32x32xf32>
    %122 = arith.mulf %117, %121 : vector<32x32xf32>
    %123 = vector.broadcast %22 : vector<1x32xf32> to vector<32x32xf32>
    %124 = arith.mulf %122, %123 : vector<32x32xf32>
    %125 = vector.broadcast %24 : vector<1x32xf32> to vector<32x32xf32>
    %126 = arith.addf %124, %125 : vector<32x32xf32>
    %cst_69 = arith.constant dense<0.000000e+00> : vector<32x64xf32>
    %127 = tpu.matmul %126, %14, %cst_69 {dimension_numbers = #tpu.dot_dimension_numbers<[1], [0], [0], [1], [0, 0, 1, 1], [], []>} : vector<32x32xf32>, vector<32x64xf32>, vector<32x64xf32> -> vector<32x64xf32>
    %128 = vector.broadcast %16 : vector<1x64xf32> to vector<32x64xf32>
    %129 = arith.addf %127, %128 : vector<32x64xf32>
    %cst_70 = arith.constant 0.000000e+00 : f32
    %130 = vector.broadcast %cst_70 : f32 to vector<32x64xf32>
    %131 = arith.maximumf %129, %130 : vector<32x64xf32>
    %cst_71 = arith.constant dense<0.000000e+00> : vector<32x32xf32>
    %132 = tpu.matmul %131, %12, %cst_71 {dimension_numbers = #tpu.dot_dimension_numbers<[1], [0], [0], [1], [0, 0, 1, 1], [], []>} : vector<32x64xf32>, vector<64x32xf32>, vector<32x32xf32> -> vector<32x32xf32>
    %133 = vector.broadcast %34 : vector<1x32xf32> to vector<32x32xf32>
    %134 = arith.addf %132, %133 : vector<32x32xf32>
    %135 = arith.addf %104, %134 : vector<32x32xf32>
    %c0_72 = arith.constant 0 : index
    %c0_73 = arith.constant 0 : index
    %136 = vector.load %arg11[%c0_72, %c0_73] : memref<32x32xf32, #tpu.memory_space<vmem>>, vector<32x32xf32>
    tpu.vector_store %arg11[%c0_72, %c0_73], %135 {strides = array<i32>} : memref<32x32xf32, #tpu.memory_space<vmem>>, vector<32x32xf32>,
    %cst_74 = arith.constant dense<0.000000e+00> : vector<32xf32>
    %137 = vector.multi_reduction <add>, %135, %cst_74 [1] : vector<32x32xf32> to vector<32xf32>
    %138 = vector.shape_cast %137 : vector<32xf32> to vector<32x1xf32>
    %cst_75 = arith.constant 3.200000e+01 : f32
    %139 = vector.broadcast %cst_75 : f32 to vector<32x1xf32>
    %140 = arith.divf %138, %139 : vector<32x1xf32>
    %141 = vector.broadcast %140 : vector<32x1xf32> to vector<32x32xf32>
    %142 = arith.subf %135, %141 : vector<32x32xf32>
    %143 = arith.mulf %142, %142 : vector<32x32xf32>
    %cst_76 = arith.constant dense<0.000000e+00> : vector<32xf32>
    %144 = vector.multi_reduction <add>, %143, %cst_76 [1] : vector<32x32xf32> to vector<32xf32>
    %145 = vector.shape_cast %144 : vector<32xf32> to vector<32x1xf32>
    %cst_77 = arith.constant 3.200000e+01 : f32
    %146 = vector.broadcast %cst_77 : f32 to vector<32x1xf32>
    %147 = arith.divf %145, %146 : vector<32x1xf32>
    %148 = vector.broadcast %140 : vector<32x1xf32> to vector<32x32xf32>
    %149 = arith.subf %135, %148 : vector<32x32xf32>
    %cst_78 = arith.constant 9.99999974E-6 : f32
    %150 = vector.broadcast %cst_78 : f32 to vector<32x1xf32>
    %151 = arith.addf %147, %150 : vector<32x1xf32>
    %152 = math.rsqrt %151 : vector<32x1xf32>
    %153 = vector.broadcast %152 : vector<32x1xf32> to vector<32x32xf32>
    %154 = arith.mulf %149, %153 : vector<32x32xf32>
    %155 = vector.broadcast %36 : vector<1x32xf32> to vector<32x32xf32>
    %156 = arith.mulf %154, %155 : vector<32x32xf32>
    %157 = vector.broadcast %38 : vector<1x32xf32> to vector<32x32xf32>
    %158 = arith.addf %156, %157 : vector<32x32xf32>
    %c0_79 = arith.constant 0 : index
    %c0_80 = arith.constant 0 : index
    %c0_81 = arith.constant 0 : index
    %159 = vector.load %arg10[%c0_79, %c0_80, %c0_81] : memref<1x32x32xf32, #tpu.memory_space<vmem>>, vector<1x32x32xf32>
    %160 = vector.shape_cast %159 : vector<1x32x32xf32> to vector<32x32xf32>
    %161 = vector.shape_cast %158 : vector<32x32xf32> to vector<1x32x32xf32>
    tpu.vector_store %arg10[%c0_79, %c0_80, %c0_81], %161 {strides = array<i32>} : memref<1x32x32xf32, #tpu.memory_space<vmem>>, vector<1x32x32xf32>,
    return
  }
  func.func @transform_0(%arg0: i32) -> (i32, i32) {
    %c0_i32 = arith.constant 0 : i32
    %c0_i32_0 = arith.constant 0 : i32
    %c0_i32_1 = arith.constant 0 : i32
    return %c0_i32, %c0_i32_0 : i32, i32
  }
  func.func @transform_1(%arg0: i32) -> (i32, i32) {
    %c0_i32 = arith.constant 0 : i32
    %c0_i32_0 = arith.constant 0 : i32
    %c0_i32_1 = arith.constant 0 : i32
    return %c0_i32, %c0_i32_0 : i32, i32
  }
  func.func @transform_2(%arg0: i32) -> (i32, i32) {
    %c0_i32 = arith.constant 0 : i32
    %c0_i32_0 = arith.constant 0 : i32
    %c0_i32_1 = arith.constant 0 : i32
    return %c0_i32, %c0_i32_0 : i32, i32
  }
  func.func @transform_3(%arg0: i32) -> (i32, i32) {
    %c0_i32 = arith.constant 0 : i32
    %c0_i32_0 = arith.constant 0 : i32
    %c0_i32_1 = arith.constant 0 : i32
    return %c0_i32, %c0_i32_0 : i32, i32
  }
  func.func @transform_4(%arg0: i32) -> (i32, i32) {
    %c0_i32 = arith.constant 0 : i32
    %c0_i32_0 = arith.constant 0 : i32
    %c0_i32_1 = arith.constant 0 : i32
    return %c0_i32, %c0_i32_0 : i32, i32
  }
  func.func @transform_5(%arg0: i32) -> (i32, i32) {
    %c0_i32 = arith.constant 0 : i32
    %c0_i32_0 = arith.constant 0 : i32
    %c0_i32_1 = arith.constant 0 : i32
    return %c0_i32, %c0_i32_0 : i32, i32
  }
  func.func @transform_6(%arg0: i32) -> (i32, i32, i32) {
    %c0_i32 = arith.constant 0 : i32
    %c0_i32_0 = arith.constant 0 : i32
    %c0_i32_1 = arith.constant 0 : i32
    return %arg0, %c0_i32, %c0_i32_0 : i32, i32, i32
  }
  func.func @transform_7(%arg0: i32) -> (i32, i32, i32) {
    %c0_i32 = arith.constant 0 : i32
    %c0_i32_0 = arith.constant 0 : i32
    %c0_i32_1 = arith.constant 0 : i32
    return %arg0, %c0_i32, %c0_i32_0 : i32, i32, i32
  }
  func.func @transform_8(%arg0: i32) -> (i32, i32, i32) {
    %c0_i32 = arith.constant 0 : i32
    %c0_i32_0 = arith.constant 0 : i32
    %c0_i32_1 = arith.constant 0 : i32
    return %arg0, %c0_i32, %c0_i32_0 : i32, i32, i32
  }
  func.func @transform_9(%arg0: i32) -> (i32, i32, i32) {
    %c0_i32 = arith.constant 0 : i32
    %c0_i32_0 = arith.constant 0 : i32
    %c0_i32_1 = arith.constant 0 : i32
    return %arg0, %c0_i32, %c0_i32_0 : i32, i32, i32
  }
}

</mosaic_0001>

<bundles_post_ra>
// kernel: tpu_custom_call.1
= control target key start
LH: loop header
LB: loop body
LE: loop exit
PB: predicated region body
PF: predicated region fallthrough
CT: control target
= control target key end

     0   :  { %14 = vsyncpa [#allocation4], 0  ;;  %s2698_s0 = inlined_call_operand.vmem [shape: f32[32,32], index: 0, kind: input, shape index: {}]   ;;  %s2699_s1 = inlined_call_operand.vmem [shape: f32[32,32], index: 1, kind: input, shape index: {}]   ;;  %s2700_s2 = inlined_call_operand.vmem [shape: f32[16,32], index: 2, kind: input, shape index: {}]   ;;  %s2701_s3 = inlined_call_operand.vmem [shape: f32[16,32], index: 3, kind: input, shape index: {}]   ;;  %s2702_s4 = inlined_call_operand.vmem [shape: f32[32,32], index: 4, kind: input, shape index: {}]   ;;  %s2703_s5 = inlined_call_operand.vmem [shape: f32[32,32], index: 5, kind: input, shape index: {}]   ;;  %s2704_s6 = inlined_call_operand.vmem [shape: f32[2,192,32], index: 6, kind: input, shape index: {}]   ;;  %s2705_s7 = inlined_call_operand.vmem [shape: f32[2,33,64], index: 7, kind: input, shape index: {}]   ;;  %s2706_s8 = inlined_call_operand.vmem [shape: f32[2,11,32], index: 8, kind: input, shape index: {}]   ;;  %s2707_s9 = inlined_call_operand.hbm [shape: f32[2,32,32], index: 9, kind: output, shape index: {}]  }
   0x1   :  { %16 = vsyncpa [#allocation4 + $0x1], 0  ;;  %s2333_s30 = smov 0   ;;  %s2335_s10 = smov 0  }
   0x2   :  { %s2337_s11 = smov 0   ;;  %s2339_s12 = smov 0  }
   0x3 LB: > { %2713 = sst [smem:[#allocation6_spill]] %s2274_s11  ;;  %s2354_s13 = sadd.s32 4294967295, %s2278_s12   ;;  %s2278_s12 = sphi %s2339_s12, %s2721_s12   ;;  %s2274_s11 = sphi %s2337_s11, %s2723_s11   ;;  %s2270_s10 = sphi %s2335_s10, %s2725_s10   ;;  %s2266_s30 = sphi %s2333_s30, %s2724_s30  }
   0x4   : > { %s1842_s14 = sadd.s32 4294967294, %s2278_s12   ;;  %s2358_s15 = sadd.s32 1, %s2278_s12  }
   0x5   : > { %2714 = sst [smem:[#allocation7_spill]] %s2358_s15  ;;  %s233_s16 = sadd.s32 1, %s2274_s11 }
   0x6   : > { %s230_s17 = ssub.s32 %s2278_s12, %s2358_s15  ;;  %p243_p0 = scmp.ne.s32.totalorder %s2274_s11, %s2270_s10 }
   0x7   : > { %p231_p1 = scmp.eq.s32.totalorder %s230_s17, 0  ;;  %p244_p2 = scmp.eq.s32.totalorder %s2354_s13, 1 }
   0x8   : > { %p249_p3 = scmp.ne.s32.totalorder %s2270_s10, %s2266_s30  ;;  %p250_p4 = scmp.eq.s32.totalorder %s1842_s14, 1 }
   0x9   : > { %s2369_s18 = scalar_select %p231_p1, %s2274_s11, %s233_s16  }
   0xa   : > { %p2371_p5 = por %p244_p2, %p243_p0  ;;  %p2375_p6 = por %p250_p4, %p249_p3 }
   0xb   : > { %2715 = sst [smem:[#allocation8_spill]] %s2369_s18  ;;  %p1845_p7 = scmp.ge.s32.totalorder %s2278_s12, 1 }
   0xc   : > { %s2717_s20 = scalar_select %p2375_p6, 1, 0 }
   0xd   : > { %p310_p8 = scmp.lt.s32.totalorder %s2278_s12, 3 }
   0xe   : > { %2718 = sst [smem:[#allocation9_spill]] %s2717_s20 }
   0xf   : > { %p311_p9 = pnand %p1845_p7, %p310_p8 }
  0x10   : > { %s2711_s21 = sand.u32 (!%p311_p9), 1, %s2270_s10   ;;  %p356_p10 = scmp.lt.s32.totalorder (!%p311_p9), %s2354_s13, 1 }
  0x11   : > { %314 = sbr.rel (%p311_p9) target bundleno = 2568 (0xa08), region = 56  ;;  %s1846_s22 = sshll.u32 (!%p311_p9), %s2711_s21, 5 }
  0x12   : > { %s2401_s21 = scalar_lea.vmem (!%p311_p9), [#allocation3], %s1846_s22  ;;  %p1851_p11 = scmp.ne.s32.totalorder (!%p311_p9), %s2354_s13, 0 }
  0x16   : > { %s357_s23 = scalar_select %p356_p10, %s2354_s13, 1 }
  0x17   : > { %374 = sbr.rel (%p1851_p11) target bundleno = 31 (0x1f), region = 60 }
  0x18   : > { %s2135_s24 = smul.u32 192, %s357_s23  ;;  %s1909_s25 = sshll.u32 %s357_s23, 4 }
  0x19   : > { %s2136_s26 = smul.u32 40, %s357_s23  ;;  %s2389_s29 = scalar_lea.vmem %s2706_s8, %s1909_s25 }
  0x1a   : > { %s2394_s17 = scalar_lea.vmem %s2704_s6, %s2135_s24 }
  0x1b   : > { %s2399_s15 = scalar_lea.vmem %s2705_s7, %s2136_s26 }
  0x1c   : > { %v375_v0 = vld [vmem:[%s2698_s0] sm:$0xff]  ;;  %vm379_vm0 = vcmask 261120   ;;  %v376_v1 = vld [vmem:[%s2698_s0 + $0x8] sm:$0xff]  ;;  %v377_v2 = vld [vmem:[%s2698_s0 + $0x10] sm:$0xff] }
  0x1d   : > { %380 = vst.msk [vmem:[#allocation2] sm:$0xff] %vm379_vm0, %v375_v0  ;;  %381 = vst.msk [vmem:[#allocation2 + $0x8] sm:$0xff] %vm379_vm0, %v376_v1  ;;  %v378_v3 = vld [vmem:[%s2698_s0 + $0x18] sm:$0xff] }
  0x1e   : > { %382 = vst.msk [vmem:[#allocation2 + $0x10] sm:$0xff] %vm379_vm0, %v377_v2  ;;  %383 = vst.msk [vmem:[#allocation2 + $0x18] sm:$0xff] %vm379_vm0, %v378_v3 }
  0x1f PF: > { %vm428_vm1 = vcmask 261120   ;;  %v387_v32 = vld [vmem:[%s2394_s17 + $0x18] sm:$0xff]  ;;  %v386_v33 = vld [vmem:[%s2394_s17 + $0x10] sm:$0xff]  ;;  %v385_v34 = vld [vmem:[%s2394_s17 + $0x8] sm:$0xff]  ;;  %vm1564_vm2 = vcmask 523264   ;;  %s2280_s20 = smov [#allocation3]  }
  0x20   : > { %1991 = vmatprep.subr.mxu1 %v387_v32  ;;  %v384_v35 = vld [vmem:[%s2394_s17] sm:$0xff]  ;;  %v391_v36 = vld [vmem:[%s2394_s17 + $0x38] sm:$0xff]  ;;  %v499_v63 = vld [vmem:[%s2699_s1 + $0x8] sm:$0xff]  ;;  %s2222_s22 = sshll.u32 %s2280_s20, 4  ;;  %s2223_s22 = int_to_ptr.vmem [resolvable:$false] %s2222_s22 }
  0x21   : > { %1992 = vmatpush3.msra.mxu1 %v387_v32  ;;  %v1852_v50 = vld [vmem:[%s2389_s29] ss:$0 sm:$0xff]  ;;  %v1853_v52 = vld [vmem:[%s2389_s29 + $0x1] ss:$0 sm:$0xff]  ;;  %v500_v2 = vld [vmem:[%s2699_s1 + $0x10] sm:$0xff]  ;;  %s2224_s26 = scalar_lea.vmem %s2223_s22, 1024 }
  0x22   : > { %1993 = vmatprep.subr.mxu1 %v386_v33  ;;  %v498_v55 = vld [vmem:[%s2699_s1] sm:$0xff] }
  0x23   : > { %1994 = vmatpush3.msra.mxu1 %v386_v33 }
  0x24   : > { %v424_v4 = vld [vmem:[#allocation2] sm:$0xff]  ;;  %v425_v6 = vld [vmem:[#allocation2 + $0x8] sm:$0xff]  ;;  %1995 = vmatprep.subr.mxu1 %v385_v34 }
  0x25   : > { %v426_v5 = vld [vmem:[#allocation2 + $0x10] sm:$0xff]  ;;  %v429_v7 = vsel %vm428_vm1, %v424_v4, 0.0  ;;  %v427_v9 = vld [vmem:[#allocation2 + $0x18] sm:$0xff]  ;;  %v432_v10 = vsel %vm428_vm1, %v425_v6, 0.0  ;;  %1996 = vmatpush3.msra.mxu1 %v385_v34 }
  0x26   : > { %v435_v8 = vsel %vm428_vm1, %v426_v5, 0.0  ;;  %430 = vadd.xlane.f32.xlu0 %v429_v7  ;;  %v438_v11 = vsel %vm428_vm1, %v427_v9, 0.0  ;;  %1997 = vmatprep.subr.mxu1 %v384_v35  ;;  %v2492_v34 = vld [vmem:[%s2702_s4 + $0x10] sm:$0xff] }
  0x27   : > { %436 = vadd.xlane.f32.xlu1 %v435_v8  ;;  %1998 = vmatpush3.msra.mxu1 %v384_v35  ;;  %v390_v8 = vld [vmem:[%s2394_s17 + $0x30] sm:$0xff] }
  0x28   : > { %2005 = vmatprep.subr.mxu1 %v391_v36 }
  0x2a   : > { %433 = vadd.xlane.f32.xlu0 %v432_v10 }
  0x2b   : > { %439 = vadd.xlane.f32.xlu1 %v438_v11  ;;  %v389_v11 = vld [vmem:[%s2394_s17 + $0x28] sm:$0xff] }
  0xaf   : > { %v431_v12 = vpop.xlane.xlu0 %430 }
  0xb0   : > { %v437_v13 = vpop.xlane.xlu1 %436  ;;  %v442_v14 = vmul.f32 0.03125, %v431_v12 }
  0xb1   : > { %v444_v15 = vmul.f32 0.03125, %v437_v13  ;;  %v607_v13 = vld [vmem:[%s2700_s2] sm:$0xff] }
  0xb2   : > { %v446_v16 = vsub.f32 %v424_v4, %v442_v14  ;;  %v388_v14 = vld [vmem:[%s2394_s17 + $0x20] sm:$0xff] }
  0xb3   : > { %v448_v17 = vsub.f32 %v426_v5, %v444_v15  ;;  %v434_v18 = vpop.xlane.xlu0 %433  ;;  %v608_v15 = vld [vmem:[%s2700_s2 + $0x8] sm:$0xff] }
  0xb4   : > { %v440_v19 = vpop.xlane.xlu1 %439  ;;  %v443_v20 = vmul.f32 0.03125, %v434_v18  ;;  %v450_v22 = vmul.f32 %v446_v16, %v446_v16  ;;  %v393_v18 = vld [vmem:[%s2394_s17 + $0x48] sm:$0xff] }
  0xb5   : > { %v445_v21 = vmul.f32 0.03125, %v440_v19  ;;  %v452_v23 = vmul.f32 %v448_v17, %v448_v17  ;;  %v392_v19 = vld [vmem:[%s2394_s17 + $0x40] sm:$0xff] }
  0xb6   : > { %v447_v24 = vsub.f32 %v425_v6, %v443_v20  ;;  %v454_v26 = vsel %vm428_vm1, %v450_v22, 0.0  ;;  %v694_v20 = vld [vmem:[%s2701_s3] sm:$0xff] }
  0xb7   : > { %v449_v25 = vsub.f32 %v427_v9, %v445_v21  ;;  %455 = vadd.xlane.f32.xlu0 %v454_v26  ;;  %v460_v27 = vsel %vm428_vm1, %v452_v23, 0.0  ;;  %v501_v9 = vld [vmem:[%s2699_s1 + $0x18] sm:$0xff]  ;;  %2024 = vmatprep.mubr.msk.f32.mxu0 %vm428_vm1, %v694_v20  ;;  %v695_v21 = vld [vmem:[%s2701_s3 + $0x8] sm:$0xff]  ;;  %v1854_v23 = vld [vmem:[%s2389_s29 + $0x4] ss:$0 sm:$0xff] }
  0xb8   : > { %v451_v28 = vmul.f32 %v447_v24, %v447_v24 }
  0xb9   : > { %v453_v29 = vmul.f32 %v449_v25, %v449_v25 }
  0xba   : > { %v457_v30 = vsel %vm428_vm1, %v451_v28, 0.0  ;;  %v1859_v28 = vld [vmem:[%s2389_s29 + $0x5] ss:$0 sm:$0xff] }
  0xbb   : > { %461 = vadd.xlane.f32.xlu0 %v460_v27  ;;  %458 = vadd.xlane.f32.xlu1 %v457_v30  ;;  %v463_v31 = vsel %vm428_vm1, %v453_v29, 0.0 }
  0xbf   : > { %464 = vadd.xlane.f32.xlu1 %v463_v31  ;;  %v784_v31 = vld [vmem:[%s2702_s4 + $0x18] sm:$0xff] }
 0x140   : > { %v456_v37 = vpop.xlane.xlu0 %455 }
 0x141   : > { %v466_v38 = vmul.f32 0.03125, %v456_v37 }
 0x143   : > { %v470_v39 = vadd.f32 1e-05, %v466_v38 }
 0x144   : > { %v459_v40 = vpop.xlane.xlu1 %458  ;;  %v462_v41 = vpop.xlane.xlu0 %461 }
 0x145   : > { %2178 = vrsqrt.f32 %v470_v39  ;;  %v467_v42 = vmul.f32 0.03125, %v459_v40  ;;  %v468_v43 = vmul.f32 0.03125, %v462_v41  ;;  %v2500_v39 = vld [vmem:[%s2702_s4 + $0x8] sm:$0xff] }
 0x147   : > { %v471_v44 = vadd.f32 1e-05, %v467_v42  ;;  %v472_v45 = vadd.f32 1e-05, %v468_v43  ;;  %v2512_v42 = vld [vmem:[%s2702_s4] sm:$0xff] }
 0x148   : > { %v465_v46 = vpop.xlane.xlu1 %464 }
 0x149   : > { %2180 = vrsqrt.f32 %v471_v44  ;;  %v469_v47 = vmul.f32 0.03125, %v465_v46  ;;  %v1014_v46 = vld [vmem:[%s2703_s5 + $0x18] sm:$0xff] }
 0x14a   : > { %2182 = vrsqrt.f32 %v472_v45 }
 0x14b   : > { %v473_v48 = vadd.f32 1e-05, %v469_v47 }
 0x14d   : > { %2184 = vrsqrt.f32 %v473_v48 }
 0x152   : > { %v2179_v49 = vpop.eup %2178 }
 0x153   : > { %v478_v51 = vmul.f32 %v2179_v49, %v446_v16  ;;  %v395_v16 = vld [vmem:[%s2394_s17 + $0x58] sm:$0xff]  ;;  %v1013_v49 = vld [vmem:[%s2703_s5 + $0x10] sm:$0xff] }
 0x154   : > { %2016 = vmatprep.subr.mxu0 %v395_v16 }
 0x155   : > { %v486_v53 = vmul.f32 %v1852_v50, %v478_v51  ;;  %2017 = vmatpush3.msra.mxu0 %v395_v16  ;;  %v1011_v51 = vld [vmem:[%s2703_s5] sm:$0xff] }
 0x156   : > { %v2181_v54 = vpop.eup %2180 }
 0x157   : > { %v2183_v56 = vpop.eup %2182  ;;  %v2434_v57 = vadd.f32 %v1853_v52, %v486_v53  ;;  %v479_v58 = vmul.f32 %v2181_v54, %v447_v24  ;;  %v1862_v53 = vld [vmem:[%s2389_s29 + $0x6] ss:$0 sm:$0xff] }
 0x158   : > { %v480_v59 = vmul.f32 %v2183_v56, %v448_v17  ;;  %v394_v17 = vld [vmem:[%s2394_s17 + $0x50] sm:$0xff] }
 0x159   : > { %v502_v60 = vadd.f32 %v498_v55, %v2434_v57  ;;  %v487_v61 = vmul.f32 %v1852_v50, %v479_v58  ;;  %2018 = vmatprep.subr.mxu0 %v394_v17 }
 0x15a   : > { %v2185_v62 = vpop.eup %2184  ;;  %v488_v0 = vmul.f32 %v1852_v50, %v480_v59  ;;  %2019 = vmatpush3.msra.mxu0 %v394_v17 }
 0x15b   : > { %1999 = vmatprep.mubr.msk.f32.mxu1 %vm428_vm1, %v502_v60  ;;  %v2441_v1 = vadd.f32 %v1853_v52, %v487_v61  ;;  %v481_v3 = vmul.f32 %v2185_v62, %v449_v25  ;;  %2020 = vmatprep.subr.mxu0 %v393_v18 }
 0x15c   : > { %v2446_v4 = vadd.f32 %v1853_v52, %v488_v0  ;;  %2021 = vmatpush3.msra.mxu0 %v393_v18 }
 0x15d   : > { %v503_v5 = vadd.f32 %v499_v63, %v2441_v1  ;;  %v489_v6 = vmul.f32 %v1852_v50, %v481_v3  ;;  %2022 = vmatprep.subr.mxu0 %v392_v19  ;;  %v1012_v50 = vld [vmem:[%s2703_s5 + $0x8] sm:$0xff] }
 0x15e   : > { %v504_v7 = vadd.f32 %v500_v2, %v2446_v4  ;;  %2023 = vmatpush3.msra.mxu0 %v392_v19 }
 0x15f   : > { %2000 = vmatmul.mubr.msk.f32.vlgmr.msra.gmra.mxu1 %vm428_vm1, %v503_v5  ;;  %v2455_v10 = vadd.f32 %v1853_v52, %v489_v6  ;;  %2025 = vmatmul.mubr.msk.f32.vlgmr.msra.gmra.mxu0 %vm428_vm1, %v695_v21 }
 0x160   : > { %2006 = vmatpush3.msra.mxu1 %v391_v36  ;;  %2002 = vmatprep.mubr.msk.f32.mxu1 %vm428_vm1, %v504_v7 }
 0x161   : > { %2007 = vmatprep.subr.mxu1 %v390_v8  ;;  %v505_v12 = vadd.f32 %v501_v9, %v2455_v10 }
 0x162   : > { %2008 = vmatpush3.msra.mxu1 %v390_v8 }
 0x163   : > { %2009 = vmatprep.subr.mxu1 %v389_v11  ;;  %2003 = vmatmul.mubr.msk.f32.gmra.mxu1 %vm428_vm1, %v505_v12 }
 0x164   : > { %2010 = vmatpush3.msra.mxu1 %v389_v11  ;;  %2013 = vmatprep.mubr.msk.f32.mxu1 %vm428_vm1, %v607_v13 }
 0x165   : > { %2011 = vmatprep.subr.mxu1 %v388_v14 }
 0x166   : > { %2012 = vmatpush3.msra.mxu1 %v388_v14 }
 0x167   : > { %2014 = vmatmul.mubr.msk.f32.vlgmr.msra.gmra.mxu1 %vm428_vm1, %v608_v15 }
 0x21f   : > { %v2001_v22 = vpop.f32.mrf.mxu1  ;;  %v2026_v52 = vpop.f32.mrf.mxu0 }
 0x220   : > { %v594_v48 = vadd.f32 %v2001_v22, %v1854_v23  ;;  %v778_v54 = vadd.f32 %v2026_v52, %v1862_v53 }
 0x221   : > { %v588_v24 = vpop.f32.mrf.mxu1  ;;  %v772_v55 = vpop.f32.mrf.mxu0 }
 0x222   : > { %v589_v25 = vadd.f32 %v1854_v23, %v588_v24  ;;  %v773_v56 = vadd.f32 %v1862_v53, %v772_v55  ;;  %v800_v58 = vmul.f32 %v784_v31, %v778_v54  ;;  %v799_v24 = vmul.f32 %v2492_v34, %v778_v54 }
 0x223   : > { %v2004_v26 = vpop.f32.mrf.mxu1 }
 0x224   : > { %2035 = vmatprep.mubr.msk.f32.mxu1 %vm428_vm1, %v589_v25  ;;  %v604_v47 = vadd.f32 %v2004_v26, %v1854_v23  ;;  %v796_v59 = vmul.f32 %v784_v31, %v773_v56  ;;  %v795_v60 = vmul.f32 %v2492_v34, %v773_v56  ;;  %v794_v61 = vmul.f32 %v2500_v39, %v773_v56 }
 0x225   : > { %v598_v27 = vpop.f32.mrf.mxu1  ;;  %v793_v62 = vmul.f32 %v2512_v42, %v773_v56  ;;  %v798_v26 = vmul.f32 %v2500_v39, %v778_v54 }
 0x226   : > { %v599_v29 = vadd.f32 %v1854_v23, %v598_v27 }
 0x227   : > { %v2015_v30 = vpop.f32.mrf.mxu1 }
 0x228   : > { %v691_v32 = vadd.f32 %v2015_v30, %v1859_v28  ;;  %2046 = vmatprep.mubr.msk.f32.mxu0 %vm428_vm1, %v599_v29  ;;  %v399_v29 = vld [vmem:[%s2394_s17 + $0x78] sm:$0xff] }
 0x229   : > { %v685_v33 = vpop.f32.mrf.mxu1 }
 0x22a   : > { %v686_v35 = vadd.f32 %v1859_v28, %v685_v33  ;;  %v792_v36 = vmul.f32 %v784_v31, %v691_v32  ;;  %v791_v38 = vmul.f32 %v2492_v34, %v691_v32  ;;  %v790_v41 = vmul.f32 %v2500_v39, %v691_v32 }
 0x22b   : > { %v789_v44 = vmul.f32 %v2512_v42, %v691_v32  ;;  %v797_v28 = vmul.f32 %v2512_v42, %v778_v54 }
 0x22c   : > { %2038 = vmatprep.subr.msk.mxu0 %vm428_vm1, %v792_v36  ;;  %v788_v37 = vmul.f32 %v784_v31, %v686_v35  ;;  %v787_v40 = vmul.f32 %v2492_v34, %v686_v35  ;;  %v786_v43 = vmul.f32 %v2500_v39, %v686_v35  ;;  %v785_v45 = vmul.f32 %v2512_v42, %v686_v35  ;;  %v398_v39 = vld [vmem:[%s2394_s17 + $0x70] sm:$0xff] }
 0x22d   : > { %2039 = vmatpush3.xpose.msk.msra.mxu0 %vm428_vm1, %v792_v36 }
 0x22e   : > { %2027 = vmatprep.subr.msk.mxu1 %vm428_vm1, %v788_v37  ;;  %2040 = vmatprep.subr.msk.mxu0 %vm428_vm1, %v791_v38 }
 0x22f   : > { %2028 = vmatpush3.xpose.msk.msra.mxu1 %vm428_vm1, %v788_v37 }
 0x230   : > { %2029 = vmatprep.subr.msk.mxu1 %vm428_vm1, %v787_v40 }
 0x231   : > { %2041 = vmatpush3.xpose.msk.msra.mxu0 %vm428_vm1, %v791_v38 }
 0x232   : > { %2042 = vmatprep.subr.msk.mxu0 %vm428_vm1, %v790_v41 }
 0x233   : > { %2030 = vmatpush3.xpose.msk.msra.mxu1 %vm428_vm1, %v787_v40 }
 0x234   : > { %2031 = vmatprep.subr.msk.mxu1 %vm428_vm1, %v786_v43 }
 0x235   : > { %2043 = vmatpush3.xpose.msk.msra.mxu0 %vm428_vm1, %v790_v41 }
 0x236   : > { %2044 = vmatprep.subr.msk.mxu0 %vm428_vm1, %v789_v44 }
 0x237   : > { %2032 = vmatpush3.xpose.msk.msra.mxu1 %vm428_vm1, %v786_v43  ;;  %v397_v43 = vld [vmem:[%s2394_s17 + $0x68] sm:$0xff] }
 0x238   : > { %2033 = vmatprep.subr.msk.mxu1 %vm428_vm1, %v785_v45 }
 0x239   : > { %2045 = vmatpush3.xpose.msk.msra.mxu0 %vm428_vm1, %v789_v44  ;;  %v396_v44 = vld [vmem:[%s2394_s17 + $0x60] sm:$0xff] }
 0x23a   : > { %2063 = vmatprep.subr.mxu0 %v796_v59 }
 0x23b   : > { %2034 = vmatpush3.xpose.msk.msra.mxu1 %vm428_vm1, %v785_v45 }
 0x23c   : > { %2047 = vmatmul.mubr.msk.f32.vlgmr.msra.gmra.mxu0 %vm428_vm1, %v604_v47  ;;  %2049 = vmatprep.subr.mxu1 %v1014_v46 }
 0x23d   : > { %2064 = vmatpush3.msra.mxu0 %v796_v59 }
 0x23e   : > { %2036 = vmatmul.mubr.msk.f32.vlgmr.msra.gmra.mxu1 %vm428_vm1, %v594_v48  ;;  %2065 = vmatprep.subr.mxu0 %v795_v60 }
 0x23f   : > { %2050 = vmatpush3.msra.mxu1 %v1014_v46  ;;  %2066 = vmatpush3.msra.mxu0 %v795_v60 }
 0x240   : > { %2051 = vmatprep.subr.mxu1 %v1013_v49  ;;  %2067 = vmatprep.subr.mxu0 %v794_v61 }
 0x241   : > { %2052 = vmatpush3.msra.mxu1 %v1013_v49  ;;  %2068 = vmatpush3.msra.mxu0 %v794_v61  ;;  %v1885_v49 = vld [vmem:[%s2389_s29 + $0x7] ss:$0 sm:$0xff] }
 0x242   : > { %2053 = vmatprep.subr.mxu1 %v1012_v50  ;;  %2069 = vmatprep.subr.mxu0 %v793_v62 }
 0x243   : > { %2054 = vmatpush3.msra.mxu1 %v1012_v50  ;;  %2070 = vmatpush3.msra.mxu0 %v793_v62 }
 0x244   : > { %2055 = vmatprep.subr.mxu1 %v1011_v51  ;;  %2085 = vmatprep.subr.mxu0 %v399_v29 }
 0x245   : > { %2056 = vmatpush3.msra.mxu1 %v1011_v51 }
 0x246   : > { %2074 = vmatprep.subr.mxu1 %v800_v58 }
 0x2fc   : > { %v2048_v63 = vpop.f32.mrf.mxu0 }
 0x2fd   : > { %v996_v7 = vsel %vm428_vm1, %v2048_v63, -inf }
 0x2fe   : > { %v2037_v0 = vpop.f32.mrf.mxu1  ;;  %v978_v6 = vpop.f32.mrf.mxu0 }
 0x2ff   : > { %v990_v2 = vsel %vm428_vm1, %v2037_v0, -inf  ;;  %v993_v8 = vsel %vm428_vm1, %v978_v6, -inf }
 0x300   : > { %991 = vmax.xlane.f32.xlu1 %v990_v2  ;;  %v885_v3 = vpop.f32.mrf.mxu1 }
 0x301   : > { %v987_v5 = vsel %vm428_vm1, %v885_v3, -inf }
 0x302   : > { %988 = vmax.xlane.f32.xlu0 %v987_v5 }
 0x304   : > { %997 = vmax.xlane.f32.xlu1 %v996_v7 }
 0x306   : > { %994 = vmax.xlane.f32.xlu0 %v993_v8 }
 0x389   : > { %v992_v9 = vpop.xlane.xlu1 %991 }
 0x38a   : > { %v1000_v11 = vsub.f32 %v2037_v0, %v992_v9 }
 0x38b   : > { %v989_v12 = vpop.xlane.xlu0 %988 }
 0x38c   : > { %v999_v13 = vsub.f32 %v885_v3, %v989_v12  ;;  %v1005_v14 = vmul.f32 1.442695, %v1000_v11 }
 0x38d   : > { %v998_v15 = vpop.xlane.xlu1 %997 }
 0x38e   : > { %v1003_v16 = vmul.f32 1.442695, %v999_v13  ;;  %v1002_v17 = vsub.f32 %v2048_v63, %v998_v15 }
 0x38f   : > { %v995_v18 = vpop.xlane.xlu0 %994 }
 0x390   : > { %2186 = vpow2.f32 %v1003_v16  ;;  %v1001_v19 = vsub.f32 %v978_v6, %v995_v18  ;;  %v1009_v20 = vmul.f32 1.442695, %v1002_v17 }
 0x391   : > { %2188 = vpow2.f32 %v1005_v14 }
 0x392   : > { %v1007_v21 = vmul.f32 1.442695, %v1001_v19 }
 0x394   : > { %2190 = vpow2.f32 %v1007_v21 }
 0x395   : > { %2192 = vpow2.f32 %v1009_v20 }
 0x39d   : > { %v2187_v22 = vpop.eup %2186 }
 0x39e   : > { %v2189_v23 = vpop.eup %2188  ;;  %2057 = vmatprep.mubr.msk.f32.mxu1 %vm428_vm1, %v2187_v22 }
 0x39f   : > { %2058 = vmatmul.mubr.msk.f32.vlgmr.msra.gmra.mxu1 %vm428_vm1, %v2189_v23 }
 0x3a0   : > { %2075 = vmatpush3.msra.mxu1 %v800_v58 }
 0x3a1   : > { %v2191_v25 = vpop.eup %2190  ;;  %2076 = vmatprep.subr.mxu1 %v799_v24 }
 0x3a2   : > { %v2193_v27 = vpop.eup %2192  ;;  %2077 = vmatpush3.msra.mxu1 %v799_v24  ;;  %2060 = vmatprep.mubr.msk.f32.mxu1 %vm428_vm1, %v2191_v25  ;;  %v409_v24 = vld [vmem:[%s2399_s15 + $0x8] sm:$0xff] }
 0x3a3   : > { %2078 = vmatprep.subr.mxu1 %v798_v26  ;;  %2061 = vmatmul.mubr.msk.f32.gmra.mxu1 %vm428_vm1, %v2193_v27 }
 0x3a4   : > { %2079 = vmatpush3.msra.mxu1 %v798_v26  ;;  %v407_v26 = vld [vmem:[%s2394_s17 + $0xb8] sm:$0xff] }
 0x3a5   : > { %2080 = vmatprep.subr.mxu1 %v797_v28 }
 0x3a6   : > { %2081 = vmatpush3.msra.mxu1 %v797_v28  ;;  %v405_v28 = vld [vmem:[%s2394_s17 + $0xa8] sm:$0xff] }
 0x45f   : > { %v2059_v30 = vpop.f32.mrf.mxu1 }
 0x460   : > { %2194 = vrcp.f32 %v2059_v30 }
 0x461   : > { %v1093_v31 = vpop.f32.mrf.mxu1 }
 0x462   : > { %2196 = vrcp.f32 %v1093_v31 }
 0x463   : > { %v2062_v32 = vpop.f32.mrf.mxu1 }
 0x464   : > { %2198 = vrcp.f32 %v2062_v32 }
 0x465   : > { %v1103_v33 = vpop.f32.mrf.mxu1 }
 0x466   : > { %2200 = vrcp.f32 %v1103_v33 }
 0x46d   : > { %v2195_v34 = vpop.eup %2194 }
 0x46e   : > { %v1117_v37 = vmul.f32 %v2195_v34, %v2189_v23  ;;  %v410_v23 = vld [vmem:[%s2399_s15 + $0x10] sm:$0xff] }
 0x46f   : > { %v2197_v35 = vpop.eup %2196 }
 0x470   : > { %v1116_v36 = vmul.f32 %v2197_v35, %v2187_v22  ;;  %v411_v22 = vld [vmem:[%s2399_s15 + $0x18] sm:$0xff] }
 0x471   : > { %v2199_v38 = vpop.eup %2198  ;;  %2099 = vmatprep.subr.mxu1 %v411_v22 }
 0x472   : > { %2071 = vmatprep.mubr.msk.f32.mxu0 %vm428_vm1, %v1116_v36  ;;  %v1119_v42 = vmul.f32 %v2199_v38, %v2193_v27  ;;  %v406_v27 = vld [vmem:[%s2394_s17 + $0xb0] sm:$0xff] }
 0x473   : > { %v2201_v40 = vpop.eup %2200  ;;  %2072 = vmatmul.mubr.msk.f32.vlgmr.msra.gmra.mxu0 %vm428_vm1, %v1117_v37 }
 0x474   : > { %v1118_v41 = vmul.f32 %v2201_v40, %v2191_v25  ;;  %2086 = vmatpush3.msra.mxu0 %v399_v29  ;;  %v408_v25 = vld [vmem:[%s2399_s15] sm:$0xff] }
 0x475   : > { %2087 = vmatprep.subr.mxu0 %v398_v39  ;;  %v404_v29 = vld [vmem:[%s2394_s17 + $0xa0] sm:$0xff] }
 0x476   : > { %2082 = vmatprep.mubr.msk.f32.mxu1 %vm428_vm1, %v1118_v41  ;;  %2088 = vmatpush3.msra.mxu0 %v398_v39 }
 0x477   : > { %2083 = vmatmul.mubr.msk.f32.vlgmr.msra.gmra.mxu1 %vm428_vm1, %v1119_v42  ;;  %2089 = vmatprep.subr.mxu0 %v397_v43 }
 0x478   : > { %2090 = vmatpush3.msra.mxu0 %v397_v43  ;;  %2100 = vmatpush3.msra.mxu1 %v411_v22 }
 0x479   : > { %2091 = vmatprep.subr.mxu0 %v396_v44  ;;  %2101 = vmatprep.subr.mxu1 %v410_v23 }
 0x47a   : > { %2092 = vmatpush3.msra.mxu0 %v396_v44  ;;  %2102 = vmatpush3.msra.mxu1 %v410_v23  ;;  %v1890_v44 = vld [vmem:[%s2389_s29 + $0x2] ss:$0 sm:$0xff] }
 0x47b   : > { %2103 = vmatprep.subr.mxu1 %v409_v24  ;;  %2113 = vmatprep.subr.mxu0 %v407_v26 }
 0x47c   : > { %2104 = vmatpush3.msra.mxu1 %v409_v24 }
 0x47d   : > { %2105 = vmatprep.subr.mxu1 %v408_v25 }
 0x47e   : > { %2106 = vmatpush3.msra.mxu1 %v408_v25 }
 0x533   : > { %v2073_v45 = vpop.f32.mrf.mxu0 }
 0x535   : > { %v1192_v46 = vpop.f32.mrf.mxu0 }
 0x536   : > { %2093 = vmatprep.mubr.msk.f32.mxu0 %vm428_vm1, %v1192_v46 }
 0x537   : > { %v2084_v47 = vpop.f32.mrf.mxu1  ;;  %2094 = vmatmul.mubr.msk.f32.vlgmr.msra.gmra.mxu0 %vm428_vm1, %v2073_v45 }
 0x538   : > { %2114 = vmatpush3.msra.mxu0 %v407_v26 }
 0x539   : > { %v1273_v48 = vpop.f32.mrf.mxu1  ;;  %2115 = vmatprep.subr.mxu0 %v406_v27 }
 0x53a   : > { %2096 = vmatprep.mubr.msk.f32.mxu0 %vm428_vm1, %v1273_v48  ;;  %2116 = vmatpush3.msra.mxu0 %v406_v27 }
 0x53b   : > { %2097 = vmatmul.mubr.msk.f32.gmra.mxu0 %vm428_vm1, %v2084_v47  ;;  %2117 = vmatprep.subr.mxu0 %v405_v28 }
 0x53c   : > { %2118 = vmatpush3.msra.mxu0 %v405_v28 }
 0x53d   : > { %2119 = vmatprep.subr.mxu0 %v404_v29 }
 0x53e   : > { %2120 = vmatpush3.msra.mxu0 %v404_v29 }
 0x5f7   : > { %v2095_v50 = vpop.f32.mrf.mxu0 }
 0x5f8   : > { %v1370_v51 = vadd.f32 %v2095_v50, %v1885_v49 }
 0x5f9   : > { %v1364_v52 = vpop.f32.mrf.mxu0 }
 0x5fa   : > { %v2569_v53 = vadd.f32 %v1370_v51, %v2441_v1  ;;  %v1365_v54 = vadd.f32 %v1885_v49, %v1364_v52 }
 0x5fb   : > { %v2098_v55 = vpop.f32.mrf.mxu0 }
 0x5fc   : > { %v2572_v56 = vadd.f32 %v1365_v54, %v2434_v57  ;;  %v1380_v58 = vadd.f32 %v2098_v55, %v1885_v49  ;;  %v1390_v59 = vsel %vm428_vm1, %v2569_v53, 0.0 }
 0x5fd   : > { %1391 = vadd.xlane.f32.xlu1 %v1390_v59  ;;  %v1374_v60 = vpop.f32.mrf.mxu0 }
 0x5fe   : > { %v2577_v61 = vadd.f32 %v1380_v58, %v2455_v10  ;;  %v1375_v62 = vadd.f32 %v1885_v49, %v1374_v60  ;;  %v1387_v63 = vsel %vm428_vm1, %v2572_v56, 0.0  ;;  %v1891_v49 = vld [vmem:[%s2389_s29 + $0x3] ss:$0 sm:$0xff] }
 0x5ff   : > { %1388 = vadd.xlane.f32.xlu0 %v1387_v63 }
 0x600   : > { %v2582_v1 = vadd.f32 %v1375_v62, %v2446_v4  ;;  %v1396_v57 = vsel %vm428_vm1, %v2577_v61, 0.0 }
 0x601   : > { %1397 = vadd.xlane.f32.xlu1 %v1396_v57  ;;  %v403_v57 = vld [vmem:[%s2394_s17 + $0x98] sm:$0xff] }
 0x602   : > { %v1393_v0 = vsel %vm428_vm1, %v2582_v1, 0.0  ;;  %2121 = vmatprep.subr.mxu0 %v403_v57 }
 0x603   : > { %1394 = vadd.xlane.f32.xlu0 %v1393_v0  ;;  %2122 = vmatpush3.msra.mxu0 %v403_v57  ;;  %v402_v0 = vld [vmem:[%s2394_s17 + $0x90] sm:$0xff] }
 0x604   : > { %2123 = vmatprep.subr.mxu0 %v402_v0 }
 0x605   : > { %2124 = vmatpush3.msra.mxu0 %v402_v0 }
 0x686   : > { %v1392_v2 = vpop.xlane.xlu1 %1391 }
 0x687   : > { %v1400_v3 = vmul.f32 0.03125, %v1392_v2  ;;  %v401_v2 = vld [vmem:[%s2394_s17 + $0x88] sm:$0xff] }
 0x688   : > { %v1389_v10 = vpop.xlane.xlu0 %1388  ;;  %2125 = vmatprep.subr.mxu0 %v401_v2 }
 0x689   : > { %v1404_v5 = vsub.f32 %v2569_v53, %v1400_v3  ;;  %v1399_v6 = vmul.f32 0.03125, %v1389_v10  ;;  %2126 = vmatpush3.msra.mxu0 %v401_v2  ;;  %v400_v3 = vld [vmem:[%s2394_s17 + $0x80] sm:$0xff]  ;;  %s1756_s17 = sshll.u32 %s2401_s21, 4  ;;  %s2650_s17 = int_to_ptr.vmem [resolvable:$true] %s1756_s17 }
 0x68a   : > { %v1398_v7 = vpop.xlane.xlu1 %1397  ;;  %2127 = vmatprep.subr.mxu0 %v400_v3  ;;  %v1892_v10 = vld [vmem:[%s2399_s15 + $0x20] ss:$0 sm:$0xff]  ;;  %s1910_s15 = sshll.u32 %s2354_s13, 9  ;;  %s2719_s13 = sand.u32 1, %s2270_s10  }
 0x68b   : > { %v1403_v8 = vsub.f32 %v2572_v56, %v1399_v6  ;;  %v1402_v9 = vmul.f32 0.03125, %v1398_v7  ;;  %v1408_v4 = vmul.f32 %v1404_v5, %v1404_v5  ;;  %2128 = vmatpush3.msra.mxu0 %v400_v3  ;;  %v1902_v3 = vld [vmem:[%s2389_s29 + $0x9] ss:$0 sm:$0xff]  ;;  %s2648_s28 = scalar_lea.hbm %s2707_s9, %s1910_s15  ;;  %s2658_s11 = scalar_lea.sflag [#allocation4], %s2719_s13 }
 0x68c   : > { %v1395_v11 = vpop.xlane.xlu0 %1394  ;;  %s2218_s18 = scalar_lea.vmem %s2650_s17, 512  ;;  %p2225_p1 = scmp.lt.s32.totalorder %s2650_s17, %s2223_s22 }
 0x68d   : > { %v2591_v12 = vsub.f32 %v2577_v61, %v1402_v9  ;;  %v1401_v13 = vmul.f32 0.03125, %v1395_v11  ;;  %v1414_v14 = vsel %vm428_vm1, %v1408_v4, 0.0  ;;  %v1407_v15 = vmul.f32 %v1403_v8, %v1403_v8  ;;  %p2219_p12 = scmp.ne.s32.totalorder %s2650_s17, %s2218_s18  ;;  %p2226_p2 = scmp.lt.s32.totalorder %s2224_s26, %s2218_s18 }
 0x68e   : > { %1415 = vadd.xlane.f32.xlu1 %v1414_v14 }
 0x68f   : > { %v1405_v16 = vsub.f32 %v2582_v1, %v1401_v13  ;;  %v1411_v17 = vsel %vm428_vm1, %v1407_v15, 0.0  ;;  %v1410_v18 = vmul.f32 %v2591_v12, %v2591_v12  ;;  %p2220_p13 = pnand %p2219_p12, %p2371_p5  ;;  %p2227_p3 = por %p2226_p2, %p2225_p1 }
 0x690   : > { %1412 = vadd.xlane.f32.xlu0 %v1411_v17  ;;  %v1897_v17 = vld [vmem:[%s2389_s29 + $0x8] ss:$0 sm:$0xff] }
 0x691   : > { %v1420_v19 = vsel %vm428_vm1, %v1410_v18, 0.0  ;;  %v1409_v20 = vmul.f32 %v1405_v16, %v1405_v16  ;;  %p2221_p0 = pneg %p2220_p13 }
 0x692   : > { %1421 = vadd.xlane.f32.xlu1 %v1420_v19 }
 0x693   : > { %v1417_v21 = vsel %vm428_vm1, %v1409_v20, 0.0  ;;  %p2228_p4 = pnand %p2227_p3, %p2221_p0 }
 0x694   : > { %1418 = vadd.xlane.f32.xlu0 %v1417_v21 }
 0x717   : > { %v1416_v30 = vpop.xlane.xlu1 %1415 }
 0x718   : > { %v1424_v31 = vmul.f32 0.03125, %v1416_v30 }
 0x719   : > { %v1413_v32 = vpop.xlane.xlu0 %1412 }
 0x71a   : > { %v1428_v33 = vadd.f32 1e-05, %v1424_v31  ;;  %v1423_v34 = vmul.f32 0.03125, %v1413_v32 }
 0x71b   : > { %v1422_v35 = vpop.xlane.xlu1 %1421 }
 0x71c   : > { %2202 = vrsqrt.f32 %v1428_v33  ;;  %v1427_v36 = vadd.f32 1e-05, %v1423_v34  ;;  %v1426_v37 = vmul.f32 0.03125, %v1422_v35 }
 0x71d   : > { %v1419_v38 = vpop.xlane.xlu0 %1418 }
 0x71e   : > { %2204 = vrsqrt.f32 %v1427_v36  ;;  %v1430_v39 = vadd.f32 1e-05, %v1426_v37  ;;  %v1425_v40 = vmul.f32 0.03125, %v1419_v38 }
 0x720   : > { %2206 = vrsqrt.f32 %v1430_v39  ;;  %v1429_v41 = vadd.f32 1e-05, %v1425_v40 }
 0x722   : > { %2208 = vrsqrt.f32 %v1429_v41 }
 0x729   : > { %v2203_v42 = vpop.eup %2202 }
 0x72a   : > { %v1436_v43 = vmul.f32 %v2203_v42, %v1404_v5 }
 0x72b   : > { %v2205_v45 = vpop.eup %2204 }
 0x72c   : > { %v1435_v46 = vmul.f32 %v2205_v45, %v1403_v8  ;;  %v1444_v48 = vmul.f32 %v1890_v44, %v1436_v43 }
 0x72d   : > { %v2207_v47 = vpop.eup %2206 }
 0x72e   : > { %v1443_v50 = vmul.f32 %v1890_v44, %v1435_v46  ;;  %v1438_v51 = vmul.f32 %v2207_v47, %v2591_v12  ;;  %v1452_v58 = vadd.f32 %v1891_v49, %v1444_v48 }
 0x72f   : > { %v2209_v52 = vpop.eup %2208 }
 0x730   : > { %v1451_v54 = vadd.f32 %v1891_v49, %v1443_v50  ;;  %v1437_v55 = vmul.f32 %v2209_v52, %v1405_v16  ;;  %v1446_v59 = vmul.f32 %v1890_v44, %v1438_v51 }
 0x732   : > { %2107 = vmatprep.mubr.msk.f32.mxu1 %vm428_vm1, %v1451_v54  ;;  %v1445_v60 = vmul.f32 %v1890_v44, %v1437_v55  ;;  %v1454_v63 = vadd.f32 %v1891_v49, %v1446_v59 }
 0x733   : > { %2108 = vmatmul.mubr.msk.f32.vlgmr.msra.gmra.mxu1 %vm428_vm1, %v1452_v58 }
 0x734   : > { %v1453_v62 = vadd.f32 %v1891_v49, %v1445_v60 }
 0x736   : > { %2110 = vmatprep.mubr.msk.f32.mxu1 %vm428_vm1, %v1453_v62 }
 0x737   : > { %2111 = vmatmul.mubr.msk.f32.gmra.mxu1 %vm428_vm1, %v1454_v63 }
 0x7f3   : > { %v2109_v5 = vpop.f32.mrf.mxu1 }
 0x7f4   : > { %v1543_v6 = vadd.f32 %v2109_v5, %v1892_v10 }
 0x7f5   : > { %v1537_v7 = vpop.f32.mrf.mxu1 }
 0x7f6   : > { %v1538_v8 = vadd.f32 %v1892_v10, %v1537_v7  ;;  %v1557_v11 = vmax.f32 %v1543_v6, 0.0  ;;  %v1903_v6 = vld [vmem:[%s2389_s29 + $0xa] ss:$0 sm:$0xff] }
 0x7f7   : > { %v2112_v9 = vpop.f32.mrf.mxu1 }
 0x7f8   : > { %v1556_v4 = vmax.f32 %v1538_v8, 0.0  ;;  %v1553_v12 = vadd.f32 %v2112_v9, %v1892_v10 }
 0x7f9   : > { %v1547_v13 = vpop.f32.mrf.mxu1 }
 0x7fa   : > { %v1548_v14 = vadd.f32 %v1892_v10, %v1547_v13  ;;  %2129 = vmatprep.mubr.msk.f32.mxu0 %vm1564_vm2, %v1556_v4  ;;  %v1559_v16 = vmax.f32 %v1553_v12, 0.0 }
 0x7fb   : > { %2130 = vmatmul.mubr.msk.f32.vlgmr.msra.gmra.mxu0 %vm1564_vm2, %v1557_v11 }
 0x7fc   : > { %v1558_v15 = vmax.f32 %v1548_v14, 0.0 }
 0x7fe   : > { %2132 = vmatprep.mubr.msk.f32.mxu0 %vm1564_vm2, %v1558_v15 }
 0x7ff   : > { %2133 = vmatmul.mubr.msk.f32.gmra.mxu0 %vm1564_vm2, %v1559_v16 }
 0x8bb   : > { %v2131_v18 = vpop.f32.mrf.mxu0 }
 0x8bc   : > { %v1649_v19 = vadd.f32 %v2131_v18, %v1897_v17 }
 0x8bd   : > { %v1643_v20 = vpop.f32.mrf.mxu0 }
 0x8be   : > { %v1663_v21 = vadd.f32 %v1649_v19, %v2569_v53  ;;  %v1644_v22 = vadd.f32 %v1897_v17, %v1643_v20 }
 0x8bf   : > { %v2134_v23 = vpop.f32.mrf.mxu0 }
 0x8c0   : > { %1667 = vst.msk [vmem:[#allocation2 + $0x8] sm:$0xff] %vm428_vm1, %v1663_v21  ;;  %v1662_v24 = vadd.f32 %v1644_v22, %v2572_v56  ;;  %v1659_v25 = vadd.f32 %v2134_v23, %v1897_v17  ;;  %v1673_v26 = vsel %vm428_vm1, %v1663_v21, 0.0 }
 0x8c1   : > { %1674 = vadd.xlane.f32.xlu1 %v1673_v26  ;;  %v1653_v27 = vpop.f32.mrf.mxu0 }
 0x8c2   : > { %1666 = vst.msk [vmem:[#allocation2] sm:$0xff] %vm428_vm1, %v1662_v24  ;;  %v1665_v28 = vadd.f32 %v1659_v25, %v2577_v61  ;;  %v1654_v29 = vadd.f32 %v1897_v17, %v1653_v27  ;;  %v1670_v30 = vsel %vm428_vm1, %v1662_v24, 0.0 }
 0x8c3   : > { %1671 = vadd.xlane.f32.xlu0 %v1670_v30 }
 0x8c4   : > { %1669 = vst.msk [vmem:[#allocation2 + $0x18] sm:$0xff] %vm428_vm1, %v1665_v28  ;;  %v1664_v53 = vadd.f32 %v1654_v29, %v2582_v1  ;;  %v1679_v31 = vsel %vm428_vm1, %v1665_v28, 0.0 }
 0x8c5   : > { %1680 = vadd.xlane.f32.xlu1 %v1679_v31 }
 0x8c6   : > { %1668 = vst.msk [vmem:[#allocation2 + $0x10] sm:$0xff] %vm428_vm1, %v1664_v53  ;;  %v1676_v56 = vsel %vm428_vm1, %v1664_v53, 0.0 }
 0x8c7   : > { %1677 = vadd.xlane.f32.xlu0 %v1676_v56 }
 0x94a   : > { %v1675_v32 = vpop.xlane.xlu1 %1674 }
 0x94b   : > { %v1683_v33 = vmul.f32 0.03125, %v1675_v32 }
 0x94c   : > { %v1672_v34 = vpop.xlane.xlu0 %1671 }
 0x94d   : > { %v1687_v61 = vsub.f32 %v1663_v21, %v1683_v33  ;;  %v1682_v35 = vmul.f32 0.03125, %v1672_v34 }
 0x94e   : > { %v1681_v36 = vpop.xlane.xlu1 %1680 }
 0x94f   : > { %v1686_v37 = vsub.f32 %v1662_v24, %v1682_v35  ;;  %v1685_v38 = vmul.f32 0.03125, %v1681_v36  ;;  %v1691_v39 = vmul.f32 %v1687_v61, %v1687_v61 }
 0x950   : > { %v1678_v40 = vpop.xlane.xlu0 %1677 }
 0x951   : > { %v1689_v41 = vsub.f32 %v1665_v28, %v1685_v38  ;;  %v1684_v1 = vmul.f32 0.03125, %v1678_v40  ;;  %v1697_v42 = vsel %vm428_vm1, %v1691_v39, 0.0  ;;  %v1690_v43 = vmul.f32 %v1686_v37, %v1686_v37 }
 0x952   : > { %1698 = vadd.xlane.f32.xlu1 %v1697_v42 }
 0x953   : > { %v1688_v44 = vsub.f32 %v1664_v53, %v1684_v1  ;;  %v1694_v45 = vsel %vm428_vm1, %v1690_v43, 0.0  ;;  %v1693_v46 = vmul.f32 %v1689_v41, %v1689_v41 }
 0x954   : > { %1695 = vadd.xlane.f32.xlu0 %v1694_v45 }
 0x955   : > { %v1703_v47 = vsel %vm428_vm1, %v1693_v46, 0.0  ;;  %v1692_v48 = vmul.f32 %v1688_v44, %v1688_v44 }
 0x956   : > { %1704 = vadd.xlane.f32.xlu1 %v1703_v47 }
 0x957   : > { %v1700_v49 = vsel %vm428_vm1, %v1692_v48, 0.0 }
 0x958   : > { %1701 = vadd.xlane.f32.xlu0 %v1700_v49 }
 0x9db   : > { %v1699_v50 = vpop.xlane.xlu1 %1698 }
 0x9dc   : > { %v1707_v51 = vmul.f32 0.03125, %v1699_v50 }
 0x9dd   : > { %v1696_v52 = vpop.xlane.xlu0 %1695 }
 0x9de   : > { %v1711_v54 = vadd.f32 1e-05, %v1707_v51  ;;  %v1706_v55 = vmul.f32 0.03125, %v1696_v52 }
 0x9df   : > { %v1705_v58 = vpop.xlane.xlu1 %1704 }
 0x9e0   : > { %2210 = vrsqrt.f32 %v1711_v54  ;;  %v1710_v59 = vadd.f32 1e-05, %v1706_v55  ;;  %v1709_v60 = vmul.f32 0.03125, %v1705_v58 }
 0x9e1   : > { %v1702_v62 = vpop.xlane.xlu0 %1701 }
 0x9e2   : > { %2212 = vrsqrt.f32 %v1710_v59  ;;  %v1713_v63 = vadd.f32 1e-05, %v1709_v60  ;;  %v1708_v57 = vmul.f32 0.03125, %v1702_v62 }
 0x9e4   : > { %2214 = vrsqrt.f32 %v1713_v63  ;;  %v1712_v0 = vadd.f32 1e-05, %v1708_v57 }
 0x9e6   : > { %2216 = vrsqrt.f32 %v1712_v0 }
 0x9ed   : > { %v2211_v2 = vpop.eup %2210 }
 0x9ee   : > { %v1719_v10 = vmul.f32 %v2211_v2, %v1687_v61 }
 0x9ef   : > { %v2213_v5 = vpop.eup %2212 }
 0x9f0   : > { %v1727_v7 = vmul.f32 %v1902_v3, %v1719_v10  ;;  %v1718_v8 = vmul.f32 %v2213_v5, %v1686_v37 }
 0x9f1   : > { %v2215_v9 = vpop.eup %2214 }
 0x9f2   : > { %v1735_v4 = vadd.f32 %v1903_v6, %v1727_v7  ;;  %v1726_v11 = vmul.f32 %v1902_v3, %v1718_v8  ;;  %v1721_v12 = vmul.f32 %v2215_v9, %v1689_v41 }
 0x9f3   : > { %v2217_v13 = vpop.eup %2216 }
 0x9f4   : > { %1739 = vst.msk [vmem:[%s2401_s21 + $0x8] sm:$0xff] %vm428_vm1, %v1735_v4  ;;  %v1734_v14 = vadd.f32 %v1903_v6, %v1726_v11  ;;  %v1729_v15 = vmul.f32 %v1902_v3, %v1721_v12  ;;  %v1720_v16 = vmul.f32 %v2217_v13, %v1688_v44 }
 0x9f6   : > { %1738 = vst.msk [vmem:[%s2401_s21] sm:$0xff] %vm428_vm1, %v1734_v14  ;;  %v1737_v17 = vadd.f32 %v1903_v6, %v1729_v15  ;;  %v1728_v18 = vmul.f32 %v1902_v3, %v1720_v16 }
 0x9f8   : > { %1741 = vst.msk [vmem:[%s2401_s21 + $0x18] sm:$0xff] %vm428_vm1, %v1737_v17  ;;  %v1736_v19 = vadd.f32 %v1903_v6, %v1728_v18 }
 0x9fa   : > { %1740 = vst.msk [vmem:[%s2401_s21 + $0x10] sm:$0xff] %vm428_vm1, %v1736_v19 }
 0x9fb   : > { %2231 = shalt.err (!%p2228_p4)
}
 0x9fc   : > { %s2232_s21 = scalar_lea.hbm %s2648_s28, 512  ;;  %s2236_s23 = scalar_lea.hbm %s2707_s9, 1024 }
 0x9fd   : > { %p2233_p7 = scmp.ne.s32.totalorder %s2648_s28, %s2232_s21  ;;  %p2237_p10 = scmp.lt.s32.totalorder %s2648_s28, %s2707_s9 }
 0x9fe   : > { %p2238_p11 = scmp.lt.s32.totalorder %s2236_s23, %s2232_s21 }
 0x9ff   : > { %p2234_p8 = pnand %p2233_p7, %p2371_p5 }
 0xa00   : > { %p2239_p12 = por %p2238_p11, %p2237_p10 }
 0xa01   : > { %p2235_p9 = pneg %p2234_p8 }
 0xa03   : > { %p2240_p13 = pnand %p2239_p12, %p2235_p9 }
 0xa05   : > { %2243 = shalt.err (!%p2240_p13)
}
 0xa06   : > { %s2281_s15 = smov 128   ;;  %s2282_s29 = smov 8  }
 0xa07   : > { %2137 = dma.vmem_to_hbm [thread:$0]  (%p2371_p5), %s2650_s17, 512, %s2648_s28, %s2658_s11, %s2281_s15, %s2281_s15, %s2282_s29  }
 0xa08 PF: > { %p2143_p0 = scmp.ge.s32.totalorder %s2278_s12, 2  ;;  %s1771_s13 = sand.u32 1, %s2266_s30  }
 0xa09   : > { %s1772_s18 = scalar_lea.sflag [#allocation4], %s1771_s13 }
 0xa0a   : > { %p2140_p1 = pnand %p2143_p0, %p2375_p6 }
 0xa0c   : > { %p2141_p2 = pneg %p2140_p1 }
 0xa0e   : > { %2261 = dma.done.wait (%p2141_p2), %s1772_s18, 512  }
 0xa0f   : > { %2263 = vsyncadd (%p2141_p2), %s1772_s18, 4294966784  ;;  %s2721_s12 = sld [smem:[#allocation7_spill]]  ;;  %s2724_s30 = smov %s2270_s10 }
 0xa10   : > { %s2722_s20 = sld [smem:[#allocation6_spill]] }
 0xa11   : > { %s2723_s11 = sld [smem:[#allocation8_spill]] }
 0xa15   : > { %p19_p3 = scmp.ge.s32.totalorder %s2721_s12, 4  }
 0xa16   : > { %s2725_s10 = smov %s2722_s20 }
 0xa17   :  { %21 = sbr.rel (!%p19_p3) target bundleno = 3 (0x3), region = 101 }
 0xa1c   :  { %1777 = vsyncpa [#allocation4], 1 }
 0xa1d   :  { %1779 = vsyncpa [#allocation4 + $0x1], 1 }

</bundles_post_ra>
